<compile_context>
chip_gen: v7x
topology: tpu7x:2x2x1
jax: 0.10.0
libtpu: 0.0.40
codegen_flags: <defaults>
</compile_context>

<pallas_src>
import functools

import jax
import jax.numpy as jnp
from jax.experimental import pallas as pl
from jax.experimental.pallas import tpu as pltpu


# ----------------------------------------------------------------------------
# helpers
# ----------------------------------------------------------------------------
def _round_up(v, m):
    return (v + m - 1) // m * m


def _pad2(a, rows, cols, dtype):
    out = jnp.zeros((rows, cols), dtype)
    return out.at[: a.shape[0], : a.shape[1]].set(a.astype(dtype))


# ----------------------------------------------------------------------------
# Fused kernel: (GINConv -> ReLU -> TopKPooling) x num_unit -> GINConv
# One grid step == one graph.  Everything channel-major: features are [C_pad, N_pad].
# ----------------------------------------------------------------------------
def _topkpool_fused_kernel(
    x_ref, adjT_ref, mask_ref,
    w1t0_ref, b1_0_ref, w2t0_ref, b2_0_ref,
    w1ts_ref, b1s_ref, w2ts_ref, b2s_ref,
    wps_ref,
    xo_ref, mo_ref,
    *, num_unit: int, min_score: float, tol: float = 1e-7,
):
    adjT = adjT_ref[...]          # [Np, Np] bf16, adjT[j, i] = adj[i, j] (0/1, exact)
    x_cm = x_ref[...]             # [Cp, Np] f32, channel-major node features
    m_row = mask_ref[...]         # [1, Np]  f32, lane-major node mask

    def gin(x_cm, w1t, b1, w2t, b2, relu_out):
        # GINConv (eps=0): h = MLP(x + A @ x); channel-major so no transposes.
        # MXU matmuls bf16-in / f32-accumulate; biases broadcast along lanes.
        agg = jnp.dot(x_cm.astype(jnp.bfloat16), adjT,
                      preferred_element_type=jnp.float32)          # [Cp, Np]
        h = x_cm + agg
        h = jnp.dot(w1t, h.astype(jnp.bfloat16),
                    preferred_element_type=jnp.float32) + b1       # [Hp, Np]
        h = jnp.maximum(h, 0.0)
        h = jnp.dot(w2t, h.astype(jnp.bfloat16),
                    preferred_element_type=jnp.float32) + b2       # [Hp, Np]
        if relu_out:              # outer self.activation (F.relu)
            h = jnp.maximum(h, 0.0)
        return h

    def pool(x_cm, m_row, w_col):
        # TopKPooling(min_score): score = softmax(x @ w) over live nodes,
        # keep iff score > min(score_max - tol, min_score), x <- x * score * keep.
        live = m_row > 0.0                                          # [1, Np]
        # f32 score "matvec": VPU multiply + cross-sublane reduce (no f32 MXU matvec,
        # no bf16 rounding at the keep/drop threshold).
        s = jnp.sum(x_cm * w_col, axis=0, keepdims=True)            # [1, Np] f32
        s = jnp.where(live, s, jnp.float32(-1e30))
        s_max = jnp.max(s, axis=-1, keepdims=True)                  # lane reduce
        e = jnp.where(live, jnp.exp(s - s_max), 0.0)
        denom = jnp.sum(e, axis=-1, keepdims=True) + jnp.float32(1e-16)  # PyG guard
        score = e * pl.reciprocal(denom, approx=True)               # [1, Np]
        score_max = jnp.max(score, axis=-1, keepdims=True)
        # PyG topk: thr = clamp(score_max - tol, max=min_score); keep iff score > thr
        thr = jnp.minimum(score_max - jnp.float32(tol), jnp.float32(min_score))
        keep = jnp.where((score > thr) & live, 1.0, 0.0).astype(jnp.float32)
        # drop + rescale: lane-major row broadcast over channel rows, no transpose
        return x_cm * (score * keep), keep

    # unit 0: conv0 (in -> hid) + pool0
    h = gin(x_cm, w1t0_ref[...], b1_0_ref[...], w2t0_ref[...], b2_0_ref[...], True)
    x_cm, m_row = pool(h, m_row, wps_ref[0])

    # units 1 .. num_unit-1: conv_i (hid -> hid) + pool_i
    for i in range(1, num_unit):
        h = gin(x_cm, w1ts_ref[i - 1], b1s_ref[i - 1],
                w2ts_ref[i - 1], b2s_ref[i - 1], True)
        x_cm, m_row = pool(h, m_row, wps_ref[i])

    # final conv (no outer ReLU); zero dropped/padded nodes (mirrors filtered tensors)
    h = gin(x_cm, w1ts_ref[num_unit - 1], b1s_ref[num_unit - 1],
            w2ts_ref[num_unit - 1], b2s_ref[num_unit - 1], False)
    xo_ref[...] = h * m_row          # channel-major output, lane-major mask broadcast
    mo_ref[...] = m_row


# ----------------------------------------------------------------------------
# One-time parameter preparation (padding / stacking / transposing / bf16 casts)
# ----------------------------------------------------------------------------
def prepare_params(params, in_channels, hid_channels):
    num_unit = len(params["pools"])
    assert num_unit >= 1
    f32, bf16 = jnp.float32, jnp.bfloat16
    c_p = _round_up(in_channels, 128)
    h_p = _round_up(hid_channels, 128)
    c0 = params["convs"][0]
    prep = {
        # layer 0 (in -> hid), transposed for channel-major compute
        "w1t0": _pad2(c0["w1"].T, h_p, c_p, bf16),
        "b1_0": _pad2(c0["b1"].T, h_p, 1, f32),
        "w2t0": _pad2(c0["w2"].T, h_p, h_p, bf16),
        "b2_0": _pad2(c0["b2"].T, h_p, 1, f32),
        # layers 1 .. num_unit (hid -> hid), stacked
        "w1ts": jnp.stack([_pad2(params["convs"][i]["w1"].T, h_p, h_p, bf16)
                           for i in range(1, num_unit + 1)]),
        "b1s": jnp.stack([_pad2(params["convs"][i]["b1"].T, h_p, 1, f32)
                          for i in range(1, num_unit + 1)]),
        "w2ts": jnp.stack([_pad2(params["convs"][i]["w2"].T, h_p, h_p, bf16)
                           for i in range(1, num_unit + 1)]),
        "b2s": jnp.stack([_pad2(params["convs"][i]["b2"].T, h_p, 1, f32)
                          for i in range(1, num_unit + 1)]),
        # pooling attention weights as [Hp, 1] columns (broadcast along node lanes)
        "wps": jnp.stack([_pad2(params["pools"][i], h_p, 1, f32)
                          for i in range(num_unit)]),
    }
    meta = {"num_unit": num_unit, "in_channels": in_channels,
            "hid_channels": hid_channels, "c_p": c_p, "h_p": h_p}
    return prep, meta


# ----------------------------------------------------------------------------
# Forward pass wrapper (mirrors TopKPool.forward) — single pallas_call, grid over graphs
# ----------------------------------------------------------------------------
def _vmem_cap_bytes():
    try:
        return int(pltpu.get_tpu_info().vmem_capacity_bytes)
    except Exception:
        return 64 << 20   # conservative: v7x per-TensorCore VMEM


def topk_pool_forward(prep, meta, x, adj, mask, min_score=0.001):
    single = (x.ndim == 2)
    if single:
        x, adj, mask = x[None], adj[None], mask[None]
    G, N, _ = x.shape
    mask = mask.reshape(G, N)

    f32, bf16 = jnp.float32, jnp.bfloat16
    num_unit = meta["num_unit"]
    c_in, hid = meta["in_channels"], meta["hid_channels"]
    c_p, h_p = meta["c_p"], meta["h_p"]
    n_p = _round_up(N, 128)

    # per-call activation padding only (weights were prepared once)
    x_cm = jnp.zeros((G, c_p, n_p), f32).at[:, :c_in, :N].set(
        jnp.transpose(x.astype(f32), (0, 2, 1)))
    adjT = jnp.zeros((G, n_p, n_p), bf16).at[:, :N, :N].set(
        jnp.transpose(adj, (0, 2, 1)).astype(bf16))          # 0/1 -> exact in bf16
    mask_row = jnp.zeros((G, 1, n_p), f32).at[:, 0, :N].set(mask.astype(f32))

    weights = (prep["w1t0"], prep["b1_0"], prep["w2t0"], prep["b2_0"],
               prep["w1ts"], prep["b1s"], prep["w2ts"], prep["b2s"], prep["wps"])
    ins = (x_cm, adjT, mask_row) + weights

    def gspec(shape):   # one graph per grid step, leading graph dim squeezed
        return pl.BlockSpec((None,) + shape, lambda g: (g,) + (0,) * len(shape))

    def wspec(arr):     # whole-array resident weight block (constant index -> DMA'd once)
        return pl.BlockSpec(arr.shape, lambda g, nd=arr.ndim: (0,) * nd)

    in_specs = [gspec((c_p, n_p)), gspec((n_p, n_p)), gspec((1, n_p))]
    in_specs += [wspec(a) for a in weights]
    out_specs = (gspec((h_p, n_p)), gspec((1, n_p)))

    # generation-aware VMEM budget (v7x: 64 MiB physical per TensorCore)
    act_bytes = (c_p * n_p * 4 + n_p * n_p * 2 + n_p * 4   # per-graph x, adjT, mask
                 + h_p * n_p * 4 + n_p * 4)                 # per-graph outputs
    w_bytes = sum(int(a.size) * a.dtype.itemsize for a in weights)
    needed = 2 * (act_bytes + w_bytes) + (8 << 20)
    cap = _vmem_cap_bytes()
    vmem_limit = int(min(max(needed, 32 << 20), cap - (16 << 20)))

    flops = G * ((num_unit + 1) * (2 * h_p * n_p * n_p + 4 * h_p * h_p * n_p)
                 + num_unit * 2 * h_p * n_p)
    in_bytes = sum(int(a.size) * a.dtype.itemsize for a in ins)
    out_bytes = G * (h_p * n_p + n_p) * 4
    cost = pl.CostEstimate(flops=int(flops),
                           transcendentals=int(G * num_unit * n_p),
                           bytes_accessed=int(in_bytes + out_bytes))

    kernel = functools.partial(_topkpool_fused_kernel, num_unit=num_unit,
                               min_score=float(min_score))
    xo, mo = pl.pallas_call(
        kernel,
        grid=(G,),
        out_shape=(jax.ShapeDtypeStruct((G, h_p, n_p), f32),
                   jax.ShapeDtypeStruct((G, 1, n_p), f32)),
        in_specs=in_specs,
        out_specs=out_specs,
        compiler_params=pltpu.CompilerParams(
            dimension_semantics=("parallel",),
            vmem_limit_bytes=vmem_limit),
        cost_estimate=cost,
    )(*ins)

    # strip padding + transpose the small output slab back to node-major (plain XLA)
    x_out = jnp.transpose(xo[:, :hid, :N], (0, 2, 1))       # [G, N, hid]
    m_out = mo[:, 0, :N]                                     # [G, N] survivor mask
    if single:
        return x_out[0], m_out[0].reshape(N, 1)
    return x_out, m_out


# ----------------------------------------------------------------------------
# Parameter init (deterministic, matches module __init__ shapes)
# ----------------------------------------------------------------------------
def init_params(key, in_channels, hid_channels, num_unit):
    def linear(k, fan_in, fan_out):
        kw, kb = jax.random.split(k)
        lim = 1.0 / jnp.sqrt(fan_in)
        w = jax.random.uniform(kw, (fan_in, fan_out), jnp.float32, -lim, lim)
        b = jax.random.uniform(kb, (1, fan_out), jnp.float32, -lim, lim)
        return w, b

    params = {"convs": [], "pools": []}
    keys = jax.random.split(key, 2 * (num_unit + 1) + num_unit)
    ki = 0
    dims = [in_channels] + [hid_channels] * (num_unit + 1)
    for li in range(num_unit + 1):
        w1, b1 = linear(keys[ki], dims[li], hid_channels); ki += 1
        w2, b2 = linear(keys[ki], hid_channels, hid_channels); ki += 1
        params["convs"].append({"w1": w1, "b1": b1, "w2": w2, "b2": b2})
    for _ in range(num_unit):
        params["pools"].append(
            jax.random.uniform(keys[ki], (hid_channels, 1), jnp.float32, -1.0, 1.0))
        ki += 1
    return params


# ----------------------------------------------------------------------------
# Main
# ----------------------------------------------------------------------------
if __name__ == "__main__":
    key = jax.random.PRNGKey(0)
    G, N, in_channels, hid_channels, num_unit = 2, 16, 8, 32, 2

    k_x, k_adj, k_p = jax.random.split(key, 3)
    x = jax.random.normal(k_x, (G, N, in_channels), jnp.float32)

    # random dense adjacencies (no self loops; GIN adds the self term itself)
    a = (jax.random.uniform(k_adj, (G, N, N)) < 0.25).astype(jnp.float32)
    adj = jnp.maximum(a, jnp.transpose(a, (0, 2, 1))) * (1.0 - jnp.eye(N, dtype=jnp.float32))

    mask = jnp.ones((G, N), jnp.float32)   # all nodes live initially

    params = init_params(k_p, in_channels, hid_channels, num_unit)
    prep, meta = prepare_params(params, in_channels, hid_channels)   # hoisted, done once

    out_x, out_mask = topk_pool_forward(prep, meta, x, adj, mask, min_score=0.001)
    jax.block_until_ready((out_x, out_mask))

    assert out_x.shape == (G, N, hid_channels)
    assert out_mask.shape == (G, N)
    assert bool(jnp.all(jnp.isfinite(out_x)))
    assert bool(jnp.all(jnp.isfinite(out_mask)))
    print("KERNEL_OK")
</pallas_src>

<mosaic_0001>
module attributes {stable_mosaic.version = 11 : i64} {
  func.func @_topkpool_fused_kernel(%arg0: i32, %arg1: memref<1x128x128xf32, #tpu.memory_space<vmem>>, %arg2: memref<1x128x128xbf16, #tpu.memory_space<vmem>>, %arg3: memref<1x1x128xf32, #tpu.memory_space<vmem>>, %arg4: memref<128x128xbf16, #tpu.memory_space<vmem>>, %arg5: memref<128x1xf32, #tpu.memory_space<vmem>>, %arg6: memref<128x128xbf16, #tpu.memory_space<vmem>>, %arg7: memref<128x1xf32, #tpu.memory_space<vmem>>, %arg8: memref<2x128x128xbf16, #tpu.memory_space<vmem>>, %arg9: memref<2x128x1xf32, #tpu.memory_space<vmem>>, %arg10: memref<2x128x128xbf16, #tpu.memory_space<vmem>>, %arg11: memref<2x128x1xf32, #tpu.memory_space<vmem>>, %arg12: memref<2x128x1xf32, #tpu.memory_space<vmem>>, %arg13: memref<1x128x128xf32, #tpu.memory_space<vmem>>, %arg14: memref<1x1x128xf32, #tpu.memory_space<vmem>>) attributes {dimension_semantics = [#tpu.dimension_semantics<parallel>], iteration_bounds = array<i64: 2>, scalar_prefetch = 0 : i64, scratch_operands = 0 : i64, tpu.core_type = #tpu.core_type<tc>, window_params = [{transform_indices = @transform_0, window_bounds = array<i64: 1, 128, 128>}, {transform_indices = @transform_1, window_bounds = array<i64: 1, 128, 128>}, {transform_indices = @transform_2, window_bounds = array<i64: 1, 1, 128>}, {pipeline_mode = #tpu.pipeline_mode<synchronous>, transform_indices = @transform_3, window_bounds = array<i64: 128, 128>}, {pipeline_mode = #tpu.pipeline_mode<synchronous>, transform_indices = @transform_4, window_bounds = array<i64: 128, 1>}, {pipeline_mode = #tpu.pipeline_mode<synchronous>, transform_indices = @transform_5, window_bounds = array<i64: 128, 128>}, {pipeline_mode = #tpu.pipeline_mode<synchronous>, transform_indices = @transform_6, window_bounds = array<i64: 128, 1>}, {pipeline_mode = #tpu.pipeline_mode<synchronous>, transform_indices = @transform_7, window_bounds = array<i64: 2, 128, 128>}, {pipeline_mode = #tpu.pipeline_mode<synchronous>, transform_indices = @transform_8, window_bounds = array<i64: 2, 128, 1>}, {pipeline_mode = #tpu.pipeline_mode<synchronous>, transform_indices = @transform_9, window_bounds = array<i64: 2, 128, 128>}, {pipeline_mode = #tpu.pipeline_mode<synchronous>, transform_indices = @transform_10, window_bounds = array<i64: 2, 128, 1>}, {pipeline_mode = #tpu.pipeline_mode<synchronous>, transform_indices = @transform_11, window_bounds = array<i64: 2, 128, 1>}, {transform_indices = @transform_12, window_bounds = array<i64: 1, 128, 128>}, {transform_indices = @transform_13, window_bounds = array<i64: 1, 1, 128>}]} {
    %c0 = arith.constant 0 : index
    %c0_0 = arith.constant 0 : index
    %c0_1 = arith.constant 0 : index
    %0 = vector.load %arg2[%c0, %c0_0, %c0_1] : memref<1x128x128xbf16, #tpu.memory_space<vmem>>, vector<1x128x128xbf16>
    %1 = vector.shape_cast %0 : vector<1x128x128xbf16> to vector<128x128xbf16>
    %c0_2 = arith.constant 0 : index
    %c0_3 = arith.constant 0 : index
    %c0_4 = arith.constant 0 : index
    %2 = vector.load %arg1[%c0_2, %c0_3, %c0_4] : memref<1x128x128xf32, #tpu.memory_space<vmem>>, vector<1x128x128xf32>
    %3 = vector.shape_cast %2 : vector<1x128x128xf32> to vector<128x128xf32>
    %c0_5 = arith.constant 0 : index
    %c0_6 = arith.constant 0 : index
    %c0_7 = arith.constant 0 : index
    %4 = vector.load %arg3[%c0_5, %c0_6, %c0_7] : memref<1x1x128xf32, #tpu.memory_space<vmem>>, vector<1x1x128xf32>
    %5 = vector.shape_cast %4 : vector<1x1x128xf32> to vector<1x128xf32>
    %c0_8 = arith.constant 0 : index
    %c0_9 = arith.constant 0 : index
    %6 = vector.load %arg4[%c0_8, %c0_9] : memref<128x128xbf16, #tpu.memory_space<vmem>>, vector<128x128xbf16>
    %c0_10 = arith.constant 0 : index
    %c0_11 = arith.constant 0 : index
    %7 = vector.load %arg5[%c0_10, %c0_11] : memref<128x1xf32, #tpu.memory_space<vmem>>, vector<128x1xf32>
    %c0_12 = arith.constant 0 : index
    %c0_13 = arith.constant 0 : index
    %8 = vector.load %arg6[%c0_12, %c0_13] : memref<128x128xbf16, #tpu.memory_space<vmem>>, vector<128x128xbf16>
    %c0_14 = arith.constant 0 : index
    %c0_15 = arith.constant 0 : index
    %9 = vector.load %arg7[%c0_14, %c0_15] : memref<128x1xf32, #tpu.memory_space<vmem>>, vector<128x1xf32>
    %10 = arith.truncf %3 : vector<128x128xf32> to vector<128x128xbf16>
    %cst = arith.constant dense<0.000000e+00> : vector<128x128xf32>
    %11 = tpu.matmul %10, %1, %cst {dimension_numbers = #tpu.dot_dimension_numbers<[1], [0], [0], [1], [0, 0, 1, 1], [], []>} : vector<128x128xbf16>, vector<128x128xbf16>, vector<128x128xf32> -> vector<128x128xf32>
    %12 = arith.addf %3, %11 : vector<128x128xf32>
    %13 = arith.truncf %12 : vector<128x128xf32> to vector<128x128xbf16>
    %cst_16 = arith.constant dense<0.000000e+00> : vector<128x128xf32>
    %14 = tpu.matmul %6, %13, %cst_16 {dimension_numbers = #tpu.dot_dimension_numbers<[1], [0], [0], [1], [0, 0, 1, 1], [], []>} : vector<128x128xbf16>, vector<128x128xbf16>, vector<128x128xf32> -> vector<128x128xf32>
    %15 = vector.broadcast %7 : vector<128x1xf32> to vector<128x128xf32>
    %16 = arith.addf %14, %15 : vector<128x128xf32>
    %cst_17 = arith.constant 0.000000e+00 : f32
    %17 = vector.broadcast %cst_17 : f32 to vector<128x128xf32>
    %18 = arith.maximumf %16, %17 : vector<128x128xf32>
    %19 = arith.truncf %18 : vector<128x128xf32> to vector<128x128xbf16>
    %cst_18 = arith.constant dense<0.000000e+00> : vector<128x128xf32>
    %20 = tpu.matmul %8, %19, %cst_18 {dimension_numbers = #tpu.dot_dimension_numbers<[1], [0], [0], [1], [0, 0, 1, 1], [], []>} : vector<128x128xbf16>, vector<128x128xbf16>, vector<128x128xf32> -> vector<128x128xf32>
    %21 = vector.broadcast %9 : vector<128x1xf32> to vector<128x128xf32>
    %22 = arith.addf %20, %21 : vector<128x128xf32>
    %cst_19 = arith.constant 0.000000e+00 : f32
    %23 = vector.broadcast %cst_19 : f32 to vector<128x128xf32>
    %24 = arith.maximumf %22, %23 : vector<128x128xf32>
    %c0_20 = arith.constant 0 : index
    %c0_21 = arith.constant 0 : index
    %c0_22 = arith.constant 0 : index
    %25 = vector.load %arg12[%c0_20, %c0_21, %c0_22] : memref<2x128x1xf32, #tpu.memory_space<vmem>>, vector<1x128x1xf32>
    %26 = vector.shape_cast %25 : vector<1x128x1xf32> to vector<128x1xf32>
    %cst_23 = arith.constant 0.000000e+00 : f32
    %27 = vector.broadcast %cst_23 : f32 to vector<1x128xf32>
    %28 = arith.cmpf ogt, %5, %27 : vector<1x128xf32>
    %29 = vector.broadcast %26 : vector<128x1xf32> to vector<128x128xf32>
    %30 = arith.mulf %24, %29 : vector<128x128xf32>
    %cst_24 = arith.constant dense<0.000000e+00> : vector<128xf32>
    %31 = vector.multi_reduction <add>, %30, %cst_24 [0] : vector<128x128xf32> to vector<128xf32>
    %32 = vector.shape_cast %31 : vector<128xf32> to vector<1x128xf32>
    %cst_25 = arith.constant -1.000000e+30 : f32
    %33 = vector.broadcast %cst_25 : f32 to vector<1x128xf32>
    %34 = arith.select %28, %32, %33 : vector<1x128xi1>, vector<1x128xf32>
    %cst_26 = arith.constant dense<0xFF800000> : vector<1xf32>
    %35 = vector.multi_reduction <maximumf>, %34, %cst_26 [1] : vector<1x128xf32> to vector<1xf32>
    %36 = vector.shape_cast %35 : vector<1xf32> to vector<1x1xf32>
    %37 = vector.broadcast %36 : vector<1x1xf32> to vector<1x128xf32>
    %38 = arith.subf %34, %37 : vector<1x128xf32>
    %39 = math.exp %38 : vector<1x128xf32>
    %cst_27 = arith.constant 0.000000e+00 : f32
    %40 = vector.broadcast %cst_27 : f32 to vector<1x128xf32>
    %41 = arith.select %28, %39, %40 : vector<1x128xi1>, vector<1x128xf32>
    %cst_28 = arith.constant dense<0.000000e+00> : vector<1xf32>
    %42 = vector.multi_reduction <add>, %41, %cst_28 [1] : vector<1x128xf32> to vector<1xf32>
    %43 = vector.shape_cast %42 : vector<1xf32> to vector<1x1xf32>
    %cst_29 = arith.constant 1.000000e-16 : f32
    %44 = vector.broadcast %cst_29 : f32 to vector<1x1xf32>
    %45 = arith.addf %43, %44 : vector<1x1xf32>
    %46 = tpu.reciprocal %45 {approx = true} : vector<1x1xf32> -> vector<1x1xf32>
    %47 = vector.broadcast %46 : vector<1x1xf32> to vector<1x128xf32>
    %48 = arith.mulf %41, %47 : vector<1x128xf32>
    %cst_30 = arith.constant dense<0xFF800000> : vector<1xf32>
    %49 = vector.multi_reduction <maximumf>, %48, %cst_30 [1] : vector<1x128xf32> to vector<1xf32>
    %50 = vector.shape_cast %49 : vector<1xf32> to vector<1x1xf32>
    %cst_31 = arith.constant 1.000000e-07 : f32
    %51 = vector.broadcast %cst_31 : f32 to vector<1x1xf32>
    %52 = arith.subf %50, %51 : vector<1x1xf32>
    %cst_32 = arith.constant 1.000000e-03 : f32
    %53 = vector.broadcast %cst_32 : f32 to vector<1x1xf32>
    %54 = arith.minimumf %52, %53 : vector<1x1xf32>
    %55 = vector.broadcast %54 : vector<1x1xf32> to vector<1x128xf32>
    %56 = arith.cmpf ogt, %48, %55 : vector<1x128xf32>
    %57 = arith.andi %56, %28 : vector<1x128xi1>
    %cst_33 = arith.constant 1.000000e+00 : f32
    %cst_34 = arith.constant 0.000000e+00 : f32
    %58 = vector.broadcast %cst_33 : f32 to vector<1x128xf32>
    %59 = vector.broadcast %cst_34 : f32 to vector<1x128xf32>
    %60 = arith.select %57, %58, %59 : vector<1x128xi1>, vector<1x128xf32>
    %61 = arith.mulf %48, %60 : vector<1x128xf32>
    %62 = vector.broadcast %61 : vector<1x128xf32> to vector<128x128xf32>
    %63 = arith.mulf %24, %62 : vector<128x128xf32>
    %c0_35 = arith.constant 0 : index
    %c0_36 = arith.constant 0 : index
    %c0_37 = arith.constant 0 : index
    %64 = vector.load %arg8[%c0_35, %c0_36, %c0_37] : memref<2x128x128xbf16, #tpu.memory_space<vmem>>, vector<1x128x128xbf16>
    %65 = vector.shape_cast %64 : vector<1x128x128xbf16> to vector<128x128xbf16>
    %c0_38 = arith.constant 0 : index
    %c0_39 = arith.constant 0 : index
    %c0_40 = arith.constant 0 : index
    %66 = vector.load %arg9[%c0_38, %c0_39, %c0_40] : memref<2x128x1xf32, #tpu.memory_space<vmem>>, vector<1x128x1xf32>
    %67 = vector.shape_cast %66 : vector<1x128x1xf32> to vector<128x1xf32>
    %c0_41 = arith.constant 0 : index
    %c0_42 = arith.constant 0 : index
    %c0_43 = arith.constant 0 : index
    %68 = vector.load %arg10[%c0_41, %c0_42, %c0_43] : memref<2x128x128xbf16, #tpu.memory_space<vmem>>, vector<1x128x128xbf16>
    %69 = vector.shape_cast %68 : vector<1x128x128xbf16> to vector<128x128xbf16>
    %c0_44 = arith.constant 0 : index
    %c0_45 = arith.constant 0 : index
    %c0_46 = arith.constant 0 : index
    %70 = vector.load %arg11[%c0_44, %c0_45, %c0_46] : memref<2x128x1xf32, #tpu.memory_space<vmem>>, vector<1x128x1xf32>
    %71 = vector.shape_cast %70 : vector<1x128x1xf32> to vector<128x1xf32>
    %72 = arith.truncf %63 : vector<128x128xf32> to vector<128x128xbf16>
    %cst_47 = arith.constant dense<0.000000e+00> : vector<128x128xf32>
    %73 = tpu.matmul %72, %1, %cst_47 {dimension_numbers = #tpu.dot_dimension_numbers<[1], [0], [0], [1], [0, 0, 1, 1], [], []>} : vector<128x128xbf16>, vector<128x128xbf16>, vector<128x128xf32> -> vector<128x128xf32>
    %74 = arith.addf %63, %73 : vector<128x128xf32>
    %75 = arith.truncf %74 : vector<128x128xf32> to vector<128x128xbf16>
    %cst_48 = arith.constant dense<0.000000e+00> : vector<128x128xf32>
    %76 = tpu.matmul %65, %75, %cst_48 {dimension_numbers = #tpu.dot_dimension_numbers<[1], [0], [0], [1], [0, 0, 1, 1], [], []>} : vector<128x128xbf16>, vector<128x128xbf16>, vector<128x128xf32> -> vector<128x128xf32>
    %77 = vector.broadcast %67 : vector<128x1xf32> to vector<128x128xf32>
    %78 = arith.addf %76, %77 : vector<128x128xf32>
    %cst_49 = arith.constant 0.000000e+00 : f32
    %79 = vector.broadcast %cst_49 : f32 to vector<128x128xf32>
    %80 = arith.maximumf %78, %79 : vector<128x128xf32>
    %81 = arith.truncf %80 : vector<128x128xf32> to vector<128x128xbf16>
    %cst_50 = arith.constant dense<0.000000e+00> : vector<128x128xf32>
    %82 = tpu.matmul %69, %81, %cst_50 {dimension_numbers = #tpu.dot_dimension_numbers<[1], [0], [0], [1], [0, 0, 1, 1], [], []>} : vector<128x128xbf16>, vector<128x128xbf16>, vector<128x128xf32> -> vector<128x128xf32>
    %83 = vector.broadcast %71 : vector<128x1xf32> to vector<128x128xf32>
    %84 = arith.addf %82, %83 : vector<128x128xf32>
    %cst_51 = arith.constant 0.000000e+00 : f32
    %85 = vector.broadcast %cst_51 : f32 to vector<128x128xf32>
    %86 = arith.maximumf %84, %85 : vector<128x128xf32>
    %c1 = arith.constant 1 : index
    %c0_52 = arith.constant 0 : index
    %c0_53 = arith.constant 0 : index
    %87 = vector.load %arg12[%c1, %c0_52, %c0_53] : memref<2x128x1xf32, #tpu.memory_space<vmem>>, vector<1x128x1xf32>
    %88 = vector.shape_cast %87 : vector<1x128x1xf32> to vector<128x1xf32>
    %cst_54 = arith.constant 0.000000e+00 : f32
    %89 = vector.broadcast %cst_54 : f32 to vector<1x128xf32>
    %90 = arith.cmpf ogt, %60, %89 : vector<1x128xf32>
    %91 = vector.broadcast %88 : vector<128x1xf32> to vector<128x128xf32>
    %92 = arith.mulf %86, %91 : vector<128x128xf32>
    %cst_55 = arith.constant dense<0.000000e+00> : vector<128xf32>
    %93 = vector.multi_reduction <add>, %92, %cst_55 [0] : vector<128x128xf32> to vector<128xf32>
    %94 = vector.shape_cast %93 : vector<128xf32> to vector<1x128xf32>
    %cst_56 = arith.constant -1.000000e+30 : f32
    %95 = vector.broadcast %cst_56 : f32 to vector<1x128xf32>
    %96 = arith.select %90, %94, %95 : vector<1x128xi1>, vector<1x128xf32>
    %cst_57 = arith.constant dense<0xFF800000> : vector<1xf32>
    %97 = vector.multi_reduction <maximumf>, %96, %cst_57 [1] : vector<1x128xf32> to vector<1xf32>
    %98 = vector.shape_cast %97 : vector<1xf32> to vector<1x1xf32>
    %99 = vector.broadcast %98 : vector<1x1xf32> to vector<1x128xf32>
    %100 = arith.subf %96, %99 : vector<1x128xf32>
    %101 = math.exp %100 : vector<1x128xf32>
    %cst_58 = arith.constant 0.000000e+00 : f32
    %102 = vector.broadcast %cst_58 : f32 to vector<1x128xf32>
    %103 = arith.select %90, %101, %102 : vector<1x128xi1>, vector<1x128xf32>
    %cst_59 = arith.constant dense<0.000000e+00> : vector<1xf32>
    %104 = vector.multi_reduction <add>, %103, %cst_59 [1] : vector<1x128xf32> to vector<1xf32>
    %105 = vector.shape_cast %104 : vector<1xf32> to vector<1x1xf32>
    %cst_60 = arith.constant 1.000000e-16 : f32
    %106 = vector.broadcast %cst_60 : f32 to vector<1x1xf32>
    %107 = arith.addf %105, %106 : vector<1x1xf32>
    %108 = tpu.reciprocal %107 {approx = true} : vector<1x1xf32> -> vector<1x1xf32>
    %109 = vector.broadcast %108 : vector<1x1xf32> to vector<1x128xf32>
    %110 = arith.mulf %103, %109 : vector<1x128xf32>
    %cst_61 = arith.constant dense<0xFF800000> : vector<1xf32>
    %111 = vector.multi_reduction <maximumf>, %110, %cst_61 [1] : vector<1x128xf32> to vector<1xf32>
    %112 = vector.shape_cast %111 : vector<1xf32> to vector<1x1xf32>
    %cst_62 = arith.constant 1.000000e-07 : f32
    %113 = vector.broadcast %cst_62 : f32 to vector<1x1xf32>
    %114 = arith.subf %112, %113 : vector<1x1xf32>
    %cst_63 = arith.constant 1.000000e-03 : f32
    %115 = vector.broadcast %cst_63 : f32 to vector<1x1xf32>
    %116 = arith.minimumf %114, %115 : vector<1x1xf32>
    %117 = vector.broadcast %116 : vector<1x1xf32> to vector<1x128xf32>
    %118 = arith.cmpf ogt, %110, %117 : vector<1x128xf32>
    %119 = arith.andi %118, %90 : vector<1x128xi1>
    %cst_64 = arith.constant 1.000000e+00 : f32
    %cst_65 = arith.constant 0.000000e+00 : f32
    %120 = vector.broadcast %cst_64 : f32 to vector<1x128xf32>
    %121 = vector.broadcast %cst_65 : f32 to vector<1x128xf32>
    %122 = arith.select %119, %120, %121 : vector<1x128xi1>, vector<1x128xf32>
    %123 = arith.mulf %110, %122 : vector<1x128xf32>
    %124 = vector.broadcast %123 : vector<1x128xf32> to vector<128x128xf32>
    %125 = arith.mulf %86, %124 : vector<128x128xf32>
    %c1_66 = arith.constant 1 : index
    %c0_67 = arith.constant 0 : index
    %c0_68 = arith.constant 0 : index
    %126 = vector.load %arg8[%c1_66, %c0_67, %c0_68] : memref<2x128x128xbf16, #tpu.memory_space<vmem>>, vector<1x128x128xbf16>
    %127 = vector.shape_cast %126 : vector<1x128x128xbf16> to vector<128x128xbf16>
    %c1_69 = arith.constant 1 : index
    %c0_70 = arith.constant 0 : index
    %c0_71 = arith.constant 0 : index
    %128 = vector.load %arg9[%c1_69, %c0_70, %c0_71] : memref<2x128x1xf32, #tpu.memory_space<vmem>>, vector<1x128x1xf32>
    %129 = vector.shape_cast %128 : vector<1x128x1xf32> to vector<128x1xf32>
    %c1_72 = arith.constant 1 : index
    %c0_73 = arith.constant 0 : index
    %c0_74 = arith.constant 0 : index
    %130 = vector.load %arg10[%c1_72, %c0_73, %c0_74] : memref<2x128x128xbf16, #tpu.memory_space<vmem>>, vector<1x128x128xbf16>
    %131 = vector.shape_cast %130 : vector<1x128x128xbf16> to vector<128x128xbf16>
    %c1_75 = arith.constant 1 : index
    %c0_76 = arith.constant 0 : index
    %c0_77 = arith.constant 0 : index
    %132 = vector.load %arg11[%c1_75, %c0_76, %c0_77] : memref<2x128x1xf32, #tpu.memory_space<vmem>>, vector<1x128x1xf32>
    %133 = vector.shape_cast %132 : vector<1x128x1xf32> to vector<128x1xf32>
    %134 = arith.truncf %125 : vector<128x128xf32> to vector<128x128xbf16>
    %cst_78 = arith.constant dense<0.000000e+00> : vector<128x128xf32>
    %135 = tpu.matmul %134, %1, %cst_78 {dimension_numbers = #tpu.dot_dimension_numbers<[1], [0], [0], [1], [0, 0, 1, 1], [], []>} : vector<128x128xbf16>, vector<128x128xbf16>, vector<128x128xf32> -> vector<128x128xf32>
    %136 = arith.addf %125, %135 : vector<128x128xf32>
    %137 = arith.truncf %136 : vector<128x128xf32> to vector<128x128xbf16>
    %cst_79 = arith.constant dense<0.000000e+00> : vector<128x128xf32>
    %138 = tpu.matmul %127, %137, %cst_79 {dimension_numbers = #tpu.dot_dimension_numbers<[1], [0], [0], [1], [0, 0, 1, 1], [], []>} : vector<128x128xbf16>, vector<128x128xbf16>, vector<128x128xf32> -> vector<128x128xf32>
    %139 = vector.broadcast %129 : vector<128x1xf32> to vector<128x128xf32>
    %140 = arith.addf %138, %139 : vector<128x128xf32>
    %cst_80 = arith.constant 0.000000e+00 : f32
    %141 = vector.broadcast %cst_80 : f32 to vector<128x128xf32>
    %142 = arith.maximumf %140, %141 : vector<128x128xf32>
    %143 = arith.truncf %142 : vector<128x128xf32> to vector<128x128xbf16>
    %cst_81 = arith.constant dense<0.000000e+00> : vector<128x128xf32>
    %144 = tpu.matmul %131, %143, %cst_81 {dimension_numbers = #tpu.dot_dimension_numbers<[1], [0], [0], [1], [0, 0, 1, 1], [], []>} : vector<128x128xbf16>, vector<128x128xbf16>, vector<128x128xf32> -> vector<128x128xf32>
    %145 = vector.broadcast %133 : vector<128x1xf32> to vector<128x128xf32>
    %146 = arith.addf %144, %145 : vector<128x128xf32>
    %147 = vector.broadcast %122 : vector<1x128xf32> to vector<128x128xf32>
    %148 = arith.mulf %146, %147 : vector<128x128xf32>
    %c0_82 = arith.constant 0 : index
    %c0_83 = arith.constant 0 : index
    %c0_84 = arith.constant 0 : index
    %149 = vector.load %arg13[%c0_82, %c0_83, %c0_84] : memref<1x128x128xf32, #tpu.memory_space<vmem>>, vector<1x128x128xf32>
    %150 = vector.shape_cast %149 : vector<1x128x128xf32> to vector<128x128xf32>
    %151 = vector.shape_cast %148 : vector<128x128xf32> to vector<1x128x128xf32>
    tpu.vector_store %arg13[%c0_82, %c0_83, %c0_84], %151 {strides = array<i32>} : memref<1x128x128xf32, #tpu.memory_space<vmem>>, vector<1x128x128xf32>,
    %c0_85 = arith.constant 0 : index
    %c0_86 = arith.constant 0 : index
    %c0_87 = arith.constant 0 : index
    %152 = vector.load %arg14[%c0_85, %c0_86, %c0_87] : memref<1x1x128xf32, #tpu.memory_space<vmem>>, vector<1x1x128xf32>
    %153 = vector.shape_cast %152 : vector<1x1x128xf32> to vector<1x128xf32>
    %154 = vector.shape_cast %122 : vector<1x128xf32> to vector<1x1x128xf32>
    tpu.vector_store %arg14[%c0_85, %c0_86, %c0_87], %154 {strides = array<i32>} : memref<1x1x128xf32, #tpu.memory_space<vmem>>, vector<1x1x128xf32>,
    return
  }
  func.func @transform_0(%arg0: i32) -> (i32, i32, i32) {
    %c0_i32 = arith.constant 0 : i32
    %c0_i32_0 = arith.constant 0 : i32
    %c0_i32_1 = arith.constant 0 : i32
    return %arg0, %c0_i32, %c0_i32_0 : i32, i32, i32
  }
  func.func @transform_1(%arg0: i32) -> (i32, i32, i32) {
    %c0_i32 = arith.constant 0 : i32
    %c0_i32_0 = arith.constant 0 : i32
    %c0_i32_1 = arith.constant 0 : i32
    return %arg0, %c0_i32, %c0_i32_0 : i32, i32, i32
  }
  func.func @transform_2(%arg0: i32) -> (i32, i32, i32) {
    %c0_i32 = arith.constant 0 : i32
    %c0_i32_0 = arith.constant 0 : i32
    %c0_i32_1 = arith.constant 0 : i32
    return %arg0, %c0_i32, %c0_i32_0 : i32, i32, i32
  }
  func.func @transform_3(%arg0: i32) -> (i32, i32) {
    %c0_i32 = arith.constant 0 : i32
    %c0_i32_0 = arith.constant 0 : i32
    %c0_i32_1 = arith.constant 0 : i32
    return %c0_i32, %c0_i32_0 : i32, i32
  }
  func.func @transform_4(%arg0: i32) -> (i32, i32) {
    %c0_i32 = arith.constant 0 : i32
    %c0_i32_0 = arith.constant 0 : i32
    %c0_i32_1 = arith.constant 0 : i32
    return %c0_i32, %c0_i32_0 : i32, i32
  }
  func.func @transform_5(%arg0: i32) -> (i32, i32) {
    %c0_i32 = arith.constant 0 : i32
    %c0_i32_0 = arith.constant 0 : i32
    %c0_i32_1 = arith.constant 0 : i32
    return %c0_i32, %c0_i32_0 : i32, i32
  }
  func.func @transform_6(%arg0: i32) -> (i32, i32) {
    %c0_i32 = arith.constant 0 : i32
    %c0_i32_0 = arith.constant 0 : i32
    %c0_i32_1 = arith.constant 0 : i32
    return %c0_i32, %c0_i32_0 : i32, i32
  }
  func.func @transform_7(%arg0: i32) -> (i32, i32, i32) {
    %c0_i32 = arith.constant 0 : i32
    %c0_i32_0 = arith.constant 0 : i32
    %c0_i32_1 = arith.constant 0 : i32
    %c0_i32_2 = arith.constant 0 : i32
    return %c0_i32, %c0_i32_0, %c0_i32_1 : i32, i32, i32
  }
  func.func @transform_8(%arg0: i32) -> (i32, i32, i32) {
    %c0_i32 = arith.constant 0 : i32
    %c0_i32_0 = arith.constant 0 : i32
    %c0_i32_1 = arith.constant 0 : i32
    %c0_i32_2 = arith.constant 0 : i32
    return %c0_i32, %c0_i32_0, %c0_i32_1 : i32, i32, i32
  }
  func.func @transform_9(%arg0: i32) -> (i32, i32, i32) {
    %c0_i32 = arith.constant 0 : i32
    %c0_i32_0 = arith.constant 0 : i32
    %c0_i32_1 = arith.constant 0 : i32
    %c0_i32_2 = arith.constant 0 : i32
    return %c0_i32, %c0_i32_0, %c0_i32_1 : i32, i32, i32
  }
  func.func @transform_10(%arg0: i32) -> (i32, i32, i32) {
    %c0_i32 = arith.constant 0 : i32
    %c0_i32_0 = arith.constant 0 : i32
    %c0_i32_1 = arith.constant 0 : i32
    %c0_i32_2 = arith.constant 0 : i32
    return %c0_i32, %c0_i32_0, %c0_i32_1 : i32, i32, i32
  }
  func.func @transform_11(%arg0: i32) -> (i32, i32, i32) {
    %c0_i32 = arith.constant 0 : i32
    %c0_i32_0 = arith.constant 0 : i32
    %c0_i32_1 = arith.constant 0 : i32
    %c0_i32_2 = arith.constant 0 : i32
    return %c0_i32, %c0_i32_0, %c0_i32_1 : i32, i32, i32
  }
  func.func @transform_12(%arg0: i32) -> (i32, i32, i32) {
    %c0_i32 = arith.constant 0 : i32
    %c0_i32_0 = arith.constant 0 : i32
    %c0_i32_1 = arith.constant 0 : i32
    return %arg0, %c0_i32, %c0_i32_0 : i32, i32, i32
  }
  func.func @transform_13(%arg0: i32) -> (i32, i32, i32) {
    %c0_i32 = arith.constant 0 : i32
    %c0_i32_0 = arith.constant 0 : i32
    %c0_i32_1 = arith.constant 0 : i32
    return %arg0, %c0_i32, %c0_i32_0 : i32, i32, i32
  }
}

</mosaic_0001>

<bundles_post_ra>
// kernel: tpu_custom_call.1
= control target key start
LH: loop header
LB: loop body
LE: loop exit
PB: predicated region body
PF: predicated region fallthrough
CT: control target
= control target key end

     0   :  { %s5164_s0 = inlined_call_operand.vmem [shape: f32[2,128,128], index: 0, kind: input, shape index: {}]   ;;  %s5165_s1 = inlined_call_operand.vmem [shape: bf16[2,128,128], index: 1, kind: input, shape index: {}]   ;;  %s5166_s2 = inlined_call_operand.vmem [shape: f32[2,1,128], index: 2, kind: input, shape index: {}]   ;;  %s5167_s3 = inlined_call_operand.vmem [shape: bf16[128,128], index: 3, kind: input, shape index: {}]   ;;  %s5168_s4 = inlined_call_operand.vmem [shape: f32[128,1], index: 4, kind: input, shape index: {}]   ;;  %s5169_s5 = inlined_call_operand.vmem [shape: bf16[128,128], index: 5, kind: input, shape index: {}]   ;;  %s5170_s6 = inlined_call_operand.vmem [shape: f32[128,1], index: 6, kind: input, shape index: {}]   ;;  %s5171_s7 = inlined_call_operand.vmem [shape: bf16[2,128,128], index: 7, kind: input, shape index: {}]   ;;  %s5172_s8 = inlined_call_operand.vmem [shape: f32[2,128,1], index: 8, kind: input, shape index: {}]   ;;  %s5173_s9 = inlined_call_operand.vmem [shape: bf16[2,128,128], index: 9, kind: input, shape index: {}]   ;;  %s5174_s10 = inlined_call_operand.vmem [shape: f32[2,128,1], index: 10, kind: input, shape index: {}]   ;;  %s5175_s11 = inlined_call_operand.vmem [shape: f32[2,128,1], index: 11, kind: input, shape index: {}]   ;;  %s5176_s12 = inlined_call_operand.hbm [shape: f32[2,128,128], index: 12, kind: output, shape index: {0}]   ;;  %s5177_s13 = inlined_call_operand.hbm [shape: f32[2,1,128], index: 13, kind: output, shape index: {1}]  }
   0x1   :  { %5179 = sst [smem:[#allocation10_spill]] %s5164_s0 }
   0x2   :  { %5180 = sst [smem:[#allocation11_spill]] %s5165_s1 }
   0x3   :  { %5181 = sst [smem:[#allocation12_spill]] %s5166_s2 }
   0x4   :  { %19 = vsyncpa [#allocation3], 0 }
   0x5   :  { %21 = vsyncpa [#allocation3 + $0x1], 0 }
   0x6   :  { %22 = vsyncpa [#allocation5], 0 }
   0x7   :  { %24 = vsyncpa [#allocation5 + $0x1], 0  ;;  %s4041_s25 = smov 0   ;;  %s4043_s26 = smov 0  }
   0x8   :  { %s4045_s27 = smov 0   ;;  %s4047_s28 = smov 0  }
   0x9 LB: > { %5182 = sst [smem:[#allocation8_spill]] %s3959_s27  ;;  %s4062_s29 = sadd.s32 4294967295, %s3963_s28   ;;  %s3963_s28 = sphi %s4047_s28, %s5193_s28   ;;  %s3959_s27 = sphi %s4045_s27, %s5190_s27   ;;  %s3955_s26 = sphi %s4043_s26, %s5192_s26   ;;  %s3951_s25 = sphi %s4041_s25, %s5191_s25  }
   0xa   : > { %s3143_s30 = sadd.s32 4294967294, %s3963_s28   ;;  %s4066_s14 = sadd.s32 1, %s3963_s28  }
   0xb   : > { %s304_s15 = sadd.s32 1, %s3959_s27  ;;  %s301_s16 = ssub.s32 %s3963_s28, %s4066_s14 }
   0xc   : > { %p314_p0 = scmp.ne.s32.totalorder %s3959_s27, %s3955_s26  ;;  %p302_p1 = scmp.eq.s32.totalorder %s301_s16, 0 }
   0xd   : > { %p315_p2 = scmp.eq.s32.totalorder %s4062_s29, 1  ;;  %p320_p3 = scmp.ne.s32.totalorder %s3955_s26, %s3951_s25 }
   0xe   : > { %p321_p4 = scmp.eq.s32.totalorder %s3143_s30, 1  ;;  %p3146_p7 = scmp.ge.s32.totalorder %s3963_s28, 1 }
   0xf   : > { %s4077_s17 = scalar_select %p302_p1, %s3959_s27, %s304_s15  }
  0x10   : > { %p4079_p5 = por %p315_p2, %p314_p0  ;;  %p4083_p6 = por %p321_p4, %p320_p3 }
  0x11   : > { %5183 = sst [smem:[#allocation9_spill]] %s4077_s17  ;;  %p414_p8 = scmp.lt.s32.totalorder %s3963_s28, 3 }
  0x13   : > { %p415_p9 = pnand %p3146_p7, %p414_p8 }
  0x14   : > { %p470_p10 = scmp.lt.s32.totalorder (!%p415_p9), %s4062_s29, 1  ;;  %s5186_s1 = sld [smem:[#allocation11_spill]] (!%p415_p9)  ;;  %v3965_v32 = vmov (!%p415_p9), 0   ;;  %v533_v33 = vld [vmem:[%s5168_s4] sm:$0xff] (!%p415_p9)  ;;  %v535_v34 = vld [vmem:[%s5168_s4 + $0x10] sm:$0xff] (!%p415_p9)  ;;  %v534_v35 = vld [vmem:[%s5168_s4 + $0x8] sm:$0xff] (!%p415_p9) }
  0x15   : > { %418 = sbr.rel (%p415_p9) target bundleno = 3299 (0xce3), region = 68  ;;  %s5187_s0 = sld [smem:[#allocation10_spill]] (!%p415_p9)  ;;  %3795 = vset.pattern.permute.xlu0 (!%p415_p9), %v3965_v32  ;;  %3796 = vset.pattern.permute.xlu1 (!%p415_p9), %v3965_v32  ;;  %v536_v36 = vld [vmem:[%s5168_s4 + $0x18] sm:$0xff] (!%p415_p9)  ;;  %v537_v37 = vld [vmem:[%s5168_s4 + $0x20] sm:$0xff] (!%p415_p9)  ;;  %v538_v39 = vld [vmem:[%s5168_s4 + $0x28] sm:$0xff] (!%p415_p9)  ;;  %vm1383_vm1 = vcmask (!%p415_p9), 1040384  }
  0x16   : > { %760 = vperm.xlu0 (!%p415_p9), %3795, %v533_v33   ;;  %770 = vperm.xlu1 (!%p415_p9), %3796, %v535_v34   ;;  %v3805_v38 = vld [vmem:[%s5167_s3] sm:$0xff] (!%p415_p9)   ;;  %v539_v40 = vld [vmem:[%s5168_s4 + $0x30] sm:$0xff] (!%p415_p9)  ;;  %v540_v41 = vld [vmem:[%s5168_s4 + $0x38] sm:$0xff] (!%p415_p9)  ;;  %s5188_s2 = sld [smem:[#allocation12_spill]] (!%p415_p9)  ;;  %s3967_s27 = smov (!%p415_p9), [#allocation4]  }
  0x17   : > { %3491 = vmatprep.mubr.bf16.mxu1 (!%p415_p9), %v3805_v38  ;;  %v541_v42 = vld [vmem:[%s5168_s4 + $0x40] sm:$0xff] (!%p415_p9)  ;;  %v542_v43 = vld [vmem:[%s5168_s4 + $0x48] sm:$0xff] (!%p415_p9)  ;;  %v543_v44 = vld [vmem:[%s5168_s4 + $0x50] sm:$0xff] (!%p415_p9)  ;;  %s3873_s17 = sshll.u32 (!%p415_p9), %s3967_s27, 4  ;;  %s3874_s17 = int_to_ptr.vmem [resolvable:$false] %s3873_s17 }
  0x18   : > { %v544_v45 = vld [vmem:[%s5168_s4 + $0x58] sm:$0xff] (!%p415_p9)  ;;  %v545_v46 = vld [vmem:[%s5168_s4 + $0x60] sm:$0xff] (!%p415_p9)  ;;  %v546_v47 = vld [vmem:[%s5168_s4 + $0x68] sm:$0xff] (!%p415_p9) }
  0x19   : > { %v547_v48 = vld [vmem:[%s5168_s4 + $0x70] sm:$0xff] (!%p415_p9)  ;;  %v548_v49 = vld [vmem:[%s5168_s4 + $0x78] sm:$0xff] (!%p415_p9)  ;;  %v565_v50 = vld [vmem:[%s5170_s6] sm:$0xff] (!%p415_p9) }
  0x1a   : > { %765 = vperm.xlu0 (!%p415_p9), %3795, %v534_v35   ;;  %775 = vperm.xlu1 (!%p415_p9), %3796, %v536_v36   ;;  %v566_v51 = vld [vmem:[%s5170_s6 + $0x8] sm:$0xff] (!%p415_p9)  ;;  %v567_v52 = vld [vmem:[%s5170_s6 + $0x10] sm:$0xff] (!%p415_p9)  ;;  %v568_v53 = vld [vmem:[%s5170_s6 + $0x18] sm:$0xff] (!%p415_p9) }
  0x1b   : > { %v1248_v54 = vld [vmem:[%s5175_s11] sm:$0xff] (!%p415_p9)  ;;  %v1249_v55 = vld [vmem:[%s5175_s11 + $0x8] sm:$0xff] (!%p415_p9)  ;;  %v1250_v57 = vld [vmem:[%s5175_s11 + $0x10] sm:$0xff] (!%p415_p9) }
  0x1c   : > { %s4091_s20 = scalar_select %p470_p10, %s4062_s29, 1  ;;  %v569_v56 = vld [vmem:[%s5170_s6 + $0x20] sm:$0xff]  ;;  %v570_v58 = vld [vmem:[%s5170_s6 + $0x28] sm:$0xff]  ;;  %v1251_v59 = vld [vmem:[%s5175_s11 + $0x18] sm:$0xff] }
  0x1d   : > { %v571_v60 = vld [vmem:[%s5170_s6 + $0x30] sm:$0xff]  ;;  %v1252_v61 = vld [vmem:[%s5175_s11 + $0x20] sm:$0xff]  ;;  %v572_v62 = vld [vmem:[%s5170_s6 + $0x38] sm:$0xff] }
  0x1e   : > { %s3297_s21 = sshll.u32 %s4091_s20, 6  ;;  %s3296_s30 = sshll.u32 %s4091_s20, 7  ;;  %780 = vperm.xlu0 %3795, %v537_v37   ;;  %785 = vperm.xlu1 %3796, %v538_v39   ;;  %v1253_v63 = vld [vmem:[%s5175_s11 + $0x28] sm:$0xff]  ;;  %v577_v32 = vld [vmem:[%s5170_s6 + $0x60] sm:$0xff]  ;;  %v1258_v33 = vld [vmem:[%s5175_s11 + $0x50] sm:$0xff] }
  0x1f   : > { %s4097_s24 = scalar_lea.vmem %s5186_s1, %s3297_s21  ;;  %s4115_s21 = scalar_lea.vmem %s5187_s0, %s3296_s30  ;;  %v578_v34 = vld [vmem:[%s5170_s6 + $0x68] sm:$0xff]  ;;  %v1259_v35 = vld [vmem:[%s5175_s11 + $0x58] sm:$0xff]  ;;  %v579_v36 = vld [vmem:[%s5170_s6 + $0x70] sm:$0xff] }
  0x20   : > { %v4100_v0 = vld [vmem:[%s4097_s24] sm:$0xff]   ;;  %v4103_v1 = vld [vmem:[%s4097_s24 + $0x8] sm:$0xff]   ;;  %v4110_v2 = vld [vmem:[%s4097_s24 + $0x10] sm:$0xff]   ;;  %s482_s22 = scalar_lea.vmem %s5188_s2, %s4091_s20  ;;  %s3293_s30 = sshll.u32 %s4062_s29, 4 }
  0x21   : > { %3443 = vmatprep.subr.bf16.mxu0 %v4100_v0  ;;  %v4120_v3 = vld [vmem:[%s4097_s24 + $0x18] sm:$0xff]   ;;  %v4123_v4 = vld [vmem:[%s4115_s21] sm:$0xff]  ;;  %v4126_v5 = vld [vmem:[%s4115_s21 + $0x8] sm:$0xff]  ;;  %s5050_s15 = scalar_lea.hbm %s5177_s13, %s3293_s30  ;;  %s3875_s20 = scalar_lea.vmem %s3874_s17, 32 }
  0x22   : > { %3444 = vmatpush3.bf16.msra.mxu0 %v4100_v0  ;;  %v581_v6 = vpack.c.bf16 %v4126_v5, %v4123_v4  ;;  %v4133_v7 = vld [vmem:[%s4097_s24 + $0x20] sm:$0xff]   ;;  %v4136_v8 = vld [vmem:[%s4097_s24 + $0x28] sm:$0xff]   ;;  %v4141_v9 = vld [vmem:[%s4097_s24 + $0x30] sm:$0xff]   ;;  %790 = vperm.xlu0 %3795, %v539_v40  }
  0x23   : > { %3445 = vmatprep.subr.bf16.mxu0 %v4103_v1  ;;  %v4146_v10 = vld [vmem:[%s4097_s24 + $0x38] sm:$0xff]   ;;  %v4151_v11 = vld [vmem:[%s4115_s21 + $0x10] sm:$0xff]  ;;  %v4157_v13 = vld [vmem:[%s4115_s21 + $0x20] sm:$0xff]  ;;  %795 = vperm.xlu1 %3796, %v540_v41  }
  0x24   : > { %3459 = vmatprep.mubr.bf16.mxu0 %v581_v6  ;;  %v4154_v12 = vld [vmem:[%s4115_s21 + $0x18] sm:$0xff]  ;;  %v4160_v14 = vld [vmem:[%s4115_s21 + $0x28] sm:$0xff]  ;;  %v4170_v17 = vld [vmem:[%s4115_s21 + $0x30] sm:$0xff] }
  0x25   : > { %v582_v15 = vpack.c.bf16 %v4154_v12, %v4151_v11  ;;  %v583_v16 = vpack.c.bf16 %v4160_v14, %v4157_v13  ;;  %v4173_v18 = vld [vmem:[%s4115_s21 + $0x38] sm:$0xff]  ;;  %v4176_v19 = vld [vmem:[%s4115_s21 + $0x40] sm:$0xff]  ;;  %v4179_v20 = vld [vmem:[%s4115_s21 + $0x48] sm:$0xff] }
  0x26   : > { %3446 = vmatpush3.bf16.msra.mxu0 %v4103_v1  ;;  %v584_v21 = vpack.c.bf16 %v4173_v18, %v4170_v17  ;;  %v585_v22 = vpack.c.bf16 %v4179_v20, %v4176_v19  ;;  %v4186_v23 = vld [vmem:[%s4115_s21 + $0x50] sm:$0xff]  ;;  %v4189_v24 = vld [vmem:[%s4115_s21 + $0x58] sm:$0xff]  ;;  %v4192_v25 = vld [vmem:[%s4115_s21 + $0x60] sm:$0xff]  ;;  %800 = vperm.xlu0 %3795, %v541_v42  }
  0x27   : > { %3447 = vmatprep.subr.bf16.mxu0 %v4110_v2  ;;  %v4195_v26 = vld [vmem:[%s4115_s21 + $0x68] sm:$0xff]  ;;  %v586_v27 = vpack.c.bf16 %v4189_v24, %v4186_v23  ;;  %v4202_v29 = vld [vmem:[%s4115_s21 + $0x70] sm:$0xff]  ;;  %v4205_v30 = vld [vmem:[%s4115_s21 + $0x78] sm:$0xff]  ;;  %805 = vperm.xlu1 %3796, %v542_v43   ;;  %s4953_s21 = sand.u32 1, %s3955_s26  }
  0x28   : > { %v587_v28 = vpack.c.bf16 %v4195_v26, %v4192_v25  ;;  %v588_v31 = vpack.c.bf16 %v4205_v30, %v4202_v29  ;;  %v573_v6 = vld [vmem:[%s5170_s6 + $0x40] sm:$0xff]  ;;  %v580_v38 = vld [vmem:[%s5170_s6 + $0x78] sm:$0xff]  ;;  %v1261_v39 = vld [vmem:[%s5175_s11 + $0x68] sm:$0xff]  ;;  %s3007_s1 = scalar_lea.sflag [#allocation5], %s4953_s21 }
  0x29   : > { %v1260_v37 = vld [vmem:[%s5175_s11 + $0x60] sm:$0xff]  ;;  %v1262_v40 = vld [vmem:[%s5175_s11 + $0x70] sm:$0xff]  ;;  %v1263_v41 = vld [vmem:[%s5175_s11 + $0x78] sm:$0xff] }
  0x2a   : > { %3448 = vmatpush3.bf16.msra.mxu0 %v4110_v2  ;;  %810 = vperm.xlu0 %3795, %v543_v44  }
  0x2b   : > { %3449 = vmatprep.subr.bf16.mxu0 %v4120_v3  ;;  %815 = vperm.xlu1 %3796, %v544_v45  }
  0x2e   : > { %3450 = vmatpush3.bf16.msra.mxu0 %v4120_v3  ;;  %820 = vperm.xlu0 %3795, %v545_v46  }
  0x2f   : > { %3451 = vmatprep.subr.bf16.mxu0 %v4133_v7  ;;  %825 = vperm.xlu1 %3796, %v546_v47  }
  0x32   : > { %3452 = vmatpush3.bf16.msra.mxu0 %v4133_v7  ;;  %830 = vperm.xlu0 %3795, %v547_v48  }
  0x33   : > { %3453 = vmatprep.subr.bf16.mxu0 %v4136_v8  ;;  %835 = vperm.xlu1 %3796, %v548_v49  }
  0x36   : > { %3454 = vmatpush3.bf16.msra.mxu0 %v4136_v8  ;;  %1009 = vperm.xlu0 %3795, %v565_v50  }
  0x37   : > { %3455 = vmatprep.subr.bf16.mxu0 %v4141_v9  ;;  %1014 = vperm.xlu1 %3796, %v566_v51  }
  0x3a   : > { %3456 = vmatpush3.bf16.msra.mxu0 %v4141_v9  ;;  %1019 = vperm.xlu0 %3795, %v567_v52  }
  0x3b   : > { %3457 = vmatprep.subr.bf16.mxu0 %v4146_v10  ;;  %1024 = vperm.xlu1 %3796, %v568_v53  }
  0x3e   : > { %3458 = vmatpush3.bf16.msra.mxu0 %v4146_v10  ;;  %1267 = vperm.xlu0 %3795, %v1248_v54  }
  0x3f   : > { %1272 = vperm.xlu1 %3796, %v1249_v55  }
  0x41   : > { %3460 = vmatmul.mubr.bf16.vlgmr.msra.gmra.mrb[0].mxu0 %v582_v15  ;;  %v1254_v15 = vld [vmem:[%s5175_s11 + $0x30] sm:$0xff] }
  0x42   : > { %3463 = vmatprep.mubr.bf16.mxu0 %v583_v16  ;;  %1029 = vperm.xlu0 %3795, %v569_v56   ;;  %v574_v16 = vld [vmem:[%s5170_s6 + $0x48] sm:$0xff] }
  0x43   : > { %1277 = vperm.xlu1 %3796, %v1250_v57  }
  0x46   : > { %1034 = vperm.xlu0 %3795, %v570_v58  }
  0x47   : > { %1282 = vperm.xlu1 %3796, %v1251_v59  }
  0x49   : > { %3464 = vmatmul.mubr.bf16.gmra.mrb[4].mxu0 %v584_v21  ;;  %v1255_v21 = vld [vmem:[%s5175_s11 + $0x38] sm:$0xff] }
  0x4a   : > { %3467 = vmatprep.mubr.bf16.mxu0 %v585_v22  ;;  %1039 = vperm.xlu0 %3795, %v571_v60   ;;  %v575_v22 = vld [vmem:[%s5170_s6 + $0x50] sm:$0xff] }
  0x4b   : > { %1287 = vperm.xlu1 %3796, %v1252_v61  }
  0x4e   : > { %1044 = vperm.xlu0 %3795, %v572_v62  }
  0x4f   : > { %1292 = vperm.xlu1 %3796, %v1253_v63  }
  0x51   : > { %3468 = vmatmul.mubr.bf16.gmra.mrb[8].mxu0 %v586_v27  ;;  %v1256_v27 = vld [vmem:[%s5175_s11 + $0x40] sm:$0xff] }
  0x52   : > { %3471 = vmatprep.mubr.bf16.mxu0 %v587_v28  ;;  %1049 = vperm.xlu0 %3795, %v573_v6   ;;  %v576_v28 = vld [vmem:[%s5170_s6 + $0x58] sm:$0xff] }
  0x53   : > { %1297 = vperm.xlu1 %3796, %v1254_v15  }
  0x56   : > { %1054 = vperm.xlu0 %3795, %v574_v16  }
  0x57   : > { %1302 = vperm.xlu1 %3796, %v1255_v21  }
  0x59   : > { %3472 = vmatmul.mubr.bf16.gmra.mrb[12].mxu0 %v588_v31  ;;  %v1257_v31 = vld [vmem:[%s5175_s11 + $0x48] sm:$0xff] }
  0x5a   : > { %1059 = vperm.xlu0 %3795, %v575_v22  }
  0x5b   : > { %1307 = vperm.xlu1 %3796, %v1256_v27  }
  0x5e   : > { %1064 = vperm.xlu0 %3795, %v576_v28   ;;  %v3806_v28 = vld [vmem:[%s5167_s3 + $0x8] sm:$0xff]  }
  0x5f   : > { %1312 = vperm.xlu1 %3796, %v1257_v31  }
  0x62   : > { %1069 = vperm.xlu0 %3795, %v577_v32  }
  0x63   : > { %1317 = vperm.xlu1 %3796, %v1258_v33  }
  0x66   : > { %1074 = vperm.xlu0 %3795, %v578_v34  }
  0x67   : > { %1322 = vperm.xlu1 %3796, %v1259_v35  }
  0x6a   : > { %1079 = vperm.xlu0 %3795, %v579_v36  }
  0x6b   : > { %1327 = vperm.xlu1 %3796, %v1260_v37  }
  0x6e   : > { %1084 = vperm.xlu0 %3795, %v580_v38  }
  0x6f   : > { %1332 = vperm.xlu1 %3796, %v1261_v39  }
  0x72   : > { %1337 = vperm.xlu0 %3795, %v1262_v40  }
  0x73   : > { %1342 = vperm.xlu1 %3796, %v1263_v41  }
 0x114   : > { %v3461_v42 = vpop.f32.mrb[0].mxu0 }
 0x115   : > { %v671_v43 = vpop.f32.mrb[1].mxu0  ;;  %v736_v45 = vadd.f32 %v3461_v42, %v4151_v11 }
 0x116   : > { %v3462_v44 = vpop.f32.mrb[2].mxu0  ;;  %v734_v48 = vadd.f32 %v671_v43, %v4123_v4 }
 0x117   : > { %v737_v46 = vadd.f32 %v3462_v44, %v4154_v12  ;;  %v674_v47 = vpop.f32.mrb[3].mxu0 }
 0x118   : > { %v735_v49 = vadd.f32 %v674_v47, %v4126_v5 }
 0x119   : > { %v751_v50 = vpack.c.bf16 %v737_v46, %v736_v45 }
 0x11a   : > { %v750_v51 = vpack.c.bf16 %v735_v49, %v734_v48 }
 0x11c   : > { %v3465_v52 = vpop.f32.mrb[4].mxu0  ;;  %3475 = vmatprep.subr.bf16.mxu1 %v750_v51 }
 0x11d   : > { %v687_v53 = vpop.f32.mrb[5].mxu0  ;;  %3476 = vmatpush3.bf16.msra.mxu1 %v750_v51  ;;  %v740_v55 = vadd.f32 %v3465_v52, %v4170_v17 }
 0x11e   : > { %v3466_v54 = vpop.f32.mrb[6].mxu0  ;;  %3477 = vmatprep.subr.bf16.mxu1 %v751_v50  ;;  %v738_v12 = vadd.f32 %v687_v53, %v4157_v13 }
 0x11f   : > { %v741_v56 = vadd.f32 %v3466_v54, %v4173_v18  ;;  %v690_v11 = vpop.f32.mrb[7].mxu0 }
 0x120   : > { %v739_v57 = vadd.f32 %v690_v11, %v4160_v14 }
 0x121   : > { %v753_v4 = vpack.c.bf16 %v741_v56, %v740_v55  ;;  %3478 = vmatpush3.bf16.msra.mxu1 %v751_v50 }
 0x122   : > { %v752_v5 = vpack.c.bf16 %v739_v57, %v738_v12 }
 0x124   : > { %v3469_v58 = vpop.f32.mrb[8].mxu0  ;;  %3479 = vmatprep.subr.bf16.mxu1 %v752_v5 }
 0x125   : > { %v703_v59 = vpop.f32.mrb[9].mxu0  ;;  %3480 = vmatpush3.bf16.msra.mxu1 %v752_v5  ;;  %v744_v61 = vadd.f32 %v3469_v58, %v4186_v23 }
 0x126   : > { %v3470_v60 = vpop.f32.mrb[10].mxu0  ;;  %3481 = vmatprep.subr.bf16.mxu1 %v753_v4  ;;  %v742_v18 = vadd.f32 %v703_v59, %v4176_v19 }
 0x127   : > { %v745_v17 = vadd.f32 %v3470_v60, %v4189_v24  ;;  %v706_v62 = vpop.f32.mrb[11].mxu0 }
 0x128   : > { %v743_v13 = vadd.f32 %v706_v62, %v4179_v20 }
 0x129   : > { %v755_v63 = vpack.c.bf16 %v745_v17, %v744_v61  ;;  %3482 = vmatpush3.bf16.msra.mxu1 %v753_v4 }
 0x12a   : > { %v754_v14 = vpack.c.bf16 %v743_v13, %v742_v18 }
 0x12c   : > { %v3473_v6 = vpop.f32.mrb[12].mxu0  ;;  %3483 = vmatprep.subr.bf16.mxu1 %v754_v14 }
 0x12d   : > { %v719_v15 = vpop.f32.mrb[13].mxu0  ;;  %3484 = vmatpush3.bf16.msra.mxu1 %v754_v14  ;;  %v748_v21 = vadd.f32 %v3473_v6, %v4202_v29  ;;  %v3807_v29 = vld [vmem:[%s5167_s3 + $0x10] sm:$0xff]  }
 0x12e   : > { %v3474_v16 = vpop.f32.mrb[14].mxu0  ;;  %3485 = vmatprep.subr.bf16.mxu1 %v755_v63  ;;  %v746_v24 = vadd.f32 %v719_v15, %v4192_v25  ;;  %v3808_v25 = vld [vmem:[%s5167_s3 + $0x18] sm:$0xff]  }
 0x12f   : > { %v749_v23 = vadd.f32 %v3474_v16, %v4205_v30  ;;  %v722_v22 = vpop.f32.mrb[15].mxu0  ;;  %v3811_v30 = vld [vmem:[%s5167_s3 + $0x30] sm:$0xff]  }
 0x130   : > { %v747_v19 = vadd.f32 %v722_v22, %v4195_v26  ;;  %v3809_v26 = vld [vmem:[%s5167_s3 + $0x20] sm:$0xff]  }
 0x131   : > { %v757_v27 = vpack.c.bf16 %v749_v23, %v748_v21  ;;  %3486 = vmatpush3.bf16.msra.mxu1 %v755_v63 }
 0x132   : > { %v756_v20 = vpack.c.bf16 %v747_v19, %v746_v24 }
 0x134   : > { %3487 = vmatprep.subr.bf16.mxu1 %v756_v20 }
 0x135   : > { %3488 = vmatpush3.bf16.msra.mxu1 %v756_v20 }
 0x136   : > { %3489 = vmatprep.subr.bf16.mxu1 %v757_v27 }
 0x139   : > { %3490 = vmatpush3.bf16.msra.mxu1 %v757_v27 }
 0x13a   : > { %3539 = vmatprep.subr.bf16.mxu1 %v4100_v0 }
 0x13c   : > { %3492 = vmatmul.mubr.bf16.vlgmr.msra.gmra.mrb[0].mxu1 %v3806_v28 }
 0x13d   : > { %3495 = vmatprep.mubr.bf16.mxu1 %v3807_v29  ;;  %3540 = vmatpush3.bf16.msra.mxu1 %v4100_v0  ;;  %v3810_v0 = vld [vmem:[%s5167_s3 + $0x28] sm:$0xff]  }
 0x13e   : > { %3541 = vmatprep.subr.bf16.mxu1 %v4103_v1 }
 0x141   : > { %3542 = vmatpush3.bf16.msra.mxu1 %v4103_v1  ;;  %v3812_v1 = vld [vmem:[%s5167_s3 + $0x38] sm:$0xff]  }
 0x142   : > { %3543 = vmatprep.subr.bf16.mxu1 %v4110_v2 }
 0x144   : > { %3496 = vmatmul.mubr.bf16.gmra.mrb[4].mxu1 %v3808_v25 }
 0x145   : > { %3499 = vmatprep.mubr.bf16.mxu1 %v3809_v26  ;;  %3544 = vmatpush3.bf16.msra.mxu1 %v4110_v2  ;;  %v3813_v2 = vld [vmem:[%s5169_s5] sm:$0xff]  }
 0x146   : > { %3545 = vmatprep.subr.bf16.mxu1 %v4120_v3  ;;  %3523 = vmatprep.mubr.bf16.mxu0 %v3813_v2 }
 0x149   : > { %3546 = vmatpush3.bf16.msra.mxu1 %v4120_v3  ;;  %v761_v3 = vpop.permute.xlu0 %760 }
 0x14a   : > { %3547 = vmatprep.subr.bf16.mxu1 %v4133_v7 }
 0x14c   : > { %3500 = vmatmul.mubr.bf16.gmra.mrb[8].mxu1 %v3810_v0 }
 0x14d   : > { %3503 = vmatprep.mubr.bf16.mxu1 %v3811_v30  ;;  %3548 = vmatpush3.bf16.msra.mxu1 %v4133_v7  ;;  %v771_v7 = vpop.permute.xlu1 %770  ;;  %v766_v31 = vpop.permute.xlu0 %765 }
 0x14e   : > { %3549 = vmatprep.subr.bf16.mxu1 %v4136_v8 }
 0x151   : > { %3550 = vmatpush3.bf16.msra.mxu1 %v4136_v8  ;;  %v776_v32 = vpop.permute.xlu1 %775  ;;  %v781_v33 = vpop.permute.xlu0 %780 }
 0x152   : > { %3551 = vmatprep.subr.bf16.mxu1 %v4141_v9 }
 0x154   : > { %3504 = vmatmul.mubr.bf16.gmra.mrb[12].mxu1 %v3812_v1 }
 0x155   : > { %3552 = vmatpush3.bf16.msra.mxu1 %v4141_v9  ;;  %v786_v8 = vpop.permute.xlu1 %785  ;;  %v791_v34 = vpop.permute.xlu0 %790 }
 0x156   : > { %3553 = vmatprep.subr.bf16.mxu1 %v4146_v10 }
 0x159   : > { %3554 = vmatpush3.bf16.msra.mxu1 %v4146_v10  ;;  %v796_v9 = vpop.permute.xlu1 %795  ;;  %v801_v44 = vpop.permute.xlu0 %800 }
 0x15d   : > { %v806_v48 = vpop.permute.xlu1 %805  ;;  %v811_v11 = vpop.permute.xlu0 %810 }
 0x161   : > { %v816_v5 = vpop.permute.xlu1 %815  ;;  %v821_v13 = vpop.permute.xlu0 %820 }
 0x165   : > { %v826_v16 = vpop.permute.xlu1 %825  ;;  %v831_v20 = vpop.permute.xlu0 %830 }
 0x169   : > { %v836_v0 = vpop.permute.xlu1 %835 }
 0x20f   : > { %v3493_v35 = vpop.f32.mrb[0].mxu1 }
 0x210   : > { %v929_v36 = vadd.f32 %v3493_v35, %v771_v7  ;;  %v920_v37 = vpop.f32.mrb[1].mxu1 }
 0x211   : > { %v921_v38 = vadd.f32 %v920_v37, %v761_v3  ;;  %v3494_v39 = vpop.f32.mrb[2].mxu1  ;;  %v3815_v37 = vld [vmem:[%s5169_s5 + $0x10] sm:$0xff]  }
 0x212   : > { %v932_v40 = vadd.f32 %v3494_v39, %v776_v32  ;;  %v923_v10 = vpop.f32.mrb[3].mxu1  ;;  %v985_v42 = vmax.f32 %v929_v36, 0.0  ;;  %v3814_v36 = vld [vmem:[%s5169_s5 + $0x8] sm:$0xff]  }
 0x213   : > { %v924_v41 = vadd.f32 %v923_v10, %v766_v31  ;;  %v983_v45 = vmax.f32 %v921_v38, 0.0  ;;  %v3817_v38 = vld [vmem:[%s5169_s5 + $0x20] sm:$0xff]   ;;  %v3818_v39 = vld [vmem:[%s5169_s5 + $0x28] sm:$0xff]   ;;  %v3820_v10 = vld [vmem:[%s5169_s5 + $0x38] sm:$0xff]  }
 0x214   : > { %v986_v43 = vmax.f32 %v932_v40, 0.0  ;;  %v3819_v40 = vld [vmem:[%s5169_s5 + $0x30] sm:$0xff]  }
 0x215   : > { %v984_v46 = vmax.f32 %v924_v41, 0.0  ;;  %v1010_v41 = vpop.permute.xlu0 %1009 }
 0x216   : > { %v1000_v47 = vpack.c.bf16 %v986_v43, %v985_v42  ;;  %v1015_v42 = vpop.permute.xlu1 %1014 }
 0x217   : > { %v999_v49 = vpack.c.bf16 %v984_v46, %v983_v45  ;;  %v3497_v50 = vpop.f32.mrb[4].mxu1 }
 0x218   : > { %v945_v51 = vadd.f32 %v3497_v50, %v791_v34  ;;  %v936_v52 = vpop.f32.mrb[5].mxu1 }
 0x219   : > { %v937_v53 = vadd.f32 %v936_v52, %v781_v33  ;;  %v3498_v54 = vpop.f32.mrb[6].mxu1  ;;  %3507 = vmatprep.subr.bf16.mxu0 %v999_v49  ;;  %v1020_v43 = vpop.permute.xlu0 %1019 }
 0x21a   : > { %v948_v55 = vadd.f32 %v3498_v54, %v796_v9  ;;  %v939_v56 = vpop.f32.mrb[7].mxu1  ;;  %3508 = vmatpush3.bf16.msra.mxu0 %v999_v49  ;;  %v989_v57 = vmax.f32 %v945_v51, 0.0  ;;  %v3816_v9 = vld [vmem:[%s5169_s5 + $0x18] sm:$0xff]  }
 0x21b   : > { %v940_v12 = vadd.f32 %v939_v56, %v786_v8  ;;  %3509 = vmatprep.subr.bf16.mxu0 %v1000_v47  ;;  %v987_v58 = vmax.f32 %v937_v53, 0.0 }
 0x21c   : > { %v990_v4 = vmax.f32 %v948_v55, 0.0 }
 0x21d   : > { %v988_v59 = vmax.f32 %v940_v12, 0.0  ;;  %v1268_v45 = vpop.permute.xlu0 %1267 }
 0x21e   : > { %v1002_v60 = vpack.c.bf16 %v990_v4, %v989_v57  ;;  %3510 = vmatpush3.bf16.msra.mxu0 %v1000_v47 }
 0x21f   : > { %v1001_v61 = vpack.c.bf16 %v988_v59, %v987_v58  ;;  %v3501_v17 = vpop.f32.mrb[8].mxu1 }
 0x220   : > { %v961_v62 = vadd.f32 %v3501_v17, %v811_v11  ;;  %v952_v18 = vpop.f32.mrb[9].mxu1 }
 0x221   : > { %v953_v63 = vadd.f32 %v952_v18, %v801_v44  ;;  %v3502_v14 = vpop.f32.mrb[10].mxu1  ;;  %3511 = vmatprep.subr.bf16.mxu0 %v1001_v61  ;;  %v1025_v44 = vpop.permute.xlu1 %1024 }
 0x222   : > { %v964_v6 = vadd.f32 %v3502_v14, %v816_v5  ;;  %v955_v15 = vpop.f32.mrb[11].mxu1  ;;  %3512 = vmatpush3.bf16.msra.mxu0 %v1001_v61  ;;  %v993_v23 = vmax.f32 %v961_v62, 0.0  ;;  %v1030_v47 = vpop.permute.xlu0 %1029 }
 0x223   : > { %v956_v21 = vadd.f32 %v955_v15, %v806_v48  ;;  %3513 = vmatprep.subr.bf16.mxu0 %v1002_v60  ;;  %v991_v24 = vmax.f32 %v953_v63, 0.0 }
 0x224   : > { %v994_v22 = vmax.f32 %v964_v6, 0.0 }
 0x225   : > { %v992_v19 = vmax.f32 %v956_v21, 0.0  ;;  %v1273_v46 = vpop.permute.xlu1 %1272 }
 0x226   : > { %v1004_v27 = vpack.c.bf16 %v994_v22, %v993_v23  ;;  %3514 = vmatpush3.bf16.msra.mxu0 %v1002_v60  ;;  %v1035_v49 = vpop.permute.xlu0 %1034 }
 0x227   : > { %v1003_v28 = vpack.c.bf16 %v992_v19, %v991_v24  ;;  %v3505_v29 = vpop.f32.mrb[12].mxu1 }
 0x228   : > { %v977_v25 = vadd.f32 %v3505_v29, %v831_v20  ;;  %v968_v26 = vpop.f32.mrb[13].mxu1 }
 0x229   : > { %v969_v30 = vadd.f32 %v968_v26, %v821_v13  ;;  %v3506_v1 = vpop.f32.mrb[14].mxu1  ;;  %3515 = vmatprep.subr.bf16.mxu0 %v1003_v28  ;;  %v1278_v48 = vpop.permute.xlu1 %1277 }
 0x22a   : > { %v980_v2 = vadd.f32 %v3506_v1, %v836_v0  ;;  %v971_v3 = vpop.f32.mrb[15].mxu1  ;;  %3516 = vmatpush3.bf16.msra.mxu0 %v1003_v28  ;;  %v997_v31 = vmax.f32 %v977_v25, 0.0  ;;  %v1040_v51 = vpop.permute.xlu0 %1039 }
 0x22b   : > { %v972_v7 = vadd.f32 %v971_v3, %v826_v16  ;;  %3517 = vmatprep.subr.bf16.mxu0 %v1004_v27  ;;  %v995_v33 = vmax.f32 %v969_v30, 0.0 }
 0x22c   : > { %v998_v32 = vmax.f32 %v980_v2, 0.0 }
 0x22d   : > { %v996_v8 = vmax.f32 %v972_v7, 0.0  ;;  %v1283_v50 = vpop.permute.xlu1 %1282 }
 0x22e   : > { %v1006_v34 = vpack.c.bf16 %v998_v32, %v997_v31  ;;  %3518 = vmatpush3.bf16.msra.mxu0 %v1004_v27  ;;  %v1045_v53 = vpop.permute.xlu0 %1044 }
 0x22f   : > { %v1005_v35 = vpack.c.bf16 %v996_v8, %v995_v33 }
 0x231   : > { %3519 = vmatprep.subr.bf16.mxu0 %v1005_v35  ;;  %v1288_v52 = vpop.permute.xlu1 %1287 }
 0x232   : > { %3520 = vmatpush3.bf16.msra.mxu0 %v1005_v35  ;;  %v1050_v55 = vpop.permute.xlu0 %1049 }
 0x233   : > { %3521 = vmatprep.subr.bf16.mxu0 %v1006_v34 }
 0x235   : > { %v1293_v54 = vpop.permute.xlu1 %1292 }
 0x236   : > { %3522 = vmatpush3.bf16.msra.mxu0 %v1006_v34  ;;  %v1055_v11 = vpop.permute.xlu0 %1054 }
 0x239   : > { %3524 = vmatmul.mubr.bf16.vlgmr.msra.gmra.mrb[16].mxu0 %v3814_v36  ;;  %v1298_v56 = vpop.permute.xlu1 %1297 }
 0x23a   : > { %3527 = vmatprep.mubr.bf16.mxu0 %v3815_v37  ;;  %v1060_v57 = vpop.permute.xlu0 %1059 }
 0x23d   : > { %v1303_v12 = vpop.permute.xlu1 %1302 }
 0x23e   : > { %v1065_v17 = vpop.permute.xlu0 %1064 }
 0x241   : > { %3528 = vmatmul.mubr.bf16.gmra.mrb[20].mxu0 %v3816_v9  ;;  %v1308_v4 = vpop.permute.xlu1 %1307 }
 0x242   : > { %3531 = vmatprep.mubr.bf16.mxu0 %v3817_v38  ;;  %v1070_v24 = vpop.permute.xlu0 %1069 }
 0x245   : > { %v1313_v14 = vpop.permute.xlu1 %1312 }
 0x246   : > { %v1075_v34 = vpop.permute.xlu0 %1074 }
 0x249   : > { %3532 = vmatmul.mubr.bf16.gmra.mrb[24].mxu0 %v3818_v39  ;;  %v1318_v26 = vpop.permute.xlu1 %1317 }
 0x24a   : > { %3535 = vmatprep.mubr.bf16.mxu0 %v3819_v40 }
 0x24d   : > { %v1323_v38 = vpop.permute.xlu1 %1322 }
 0x251   : > { %3536 = vmatmul.mubr.bf16.gmra.mrb[28].mxu0 %v3820_v10 }
 0x30c   : > { %v3525_v5 = vpop.f32.mrb[16].mxu0 }
 0x30d   : > { %v1169_v58 = vpop.f32.mrb[17].mxu0  ;;  %v4433_v59 = vadd.f32 %v3525_v5, %v1020_v43 }
 0x30e   : > { %v4435_v60 = vadd.f32 %v1169_v58, %v1010_v41  ;;  %v3526_v61 = vpop.f32.mrb[18].mxu0 }
 0x30f   : > { %v4437_v62 = vadd.f32 %v3526_v61, %v1025_v44  ;;  %v1172_v18 = vpop.f32.mrb[19].mxu0  ;;  %v1234_v6 = vmax.f32 %v4433_v59, 0.0 }
 0x310   : > { %v1232_v13 = vmax.f32 %v4435_v60, 0.0  ;;  %v4440_v63 = vadd.f32 %v1172_v18, %v1015_v42 }
 0x311   : > { %v1235_v16 = vmax.f32 %v4437_v62, 0.0  ;;  %v1347_v27 = vmul.f32 %v1278_v48, %v1234_v6 }
 0x312   : > { %v1233_v15 = vmax.f32 %v4440_v63, 0.0  ;;  %v1345_v21 = vmul.f32 %v1268_v45, %v1232_v13 }
 0x313   : > { %v1348_v0 = vmul.f32 %v1283_v50, %v1235_v16  ;;  %v1080_v50 = vpop.permute.xlu0 %1079 }
 0x314   : > { %v1346_v23 = vmul.f32 %v1273_v46, %v1233_v15  ;;  %v3529_v22 = vpop.f32.mrb[20].mxu0 }
 0x315   : > { %v1185_v19 = vpop.f32.mrb[21].mxu0  ;;  %v4451_v28 = vadd.f32 %v3529_v22, %v1040_v51 }
 0x316   : > { %v1361_v20 = vadd.f32 %v1346_v23, %v1345_v21  ;;  %v4453_v29 = vadd.f32 %v1185_v19, %v1030_v47  ;;  %v3530_v25 = vpop.f32.mrb[22].mxu0 }
 0x317   : > { %v1188_v30 = vpop.f32.mrb[23].mxu0  ;;  %v4458_v3 = vadd.f32 %v3530_v25, %v1045_v53  ;;  %v1238_v31 = vmax.f32 %v4451_v28, 0.0  ;;  %v1085_v21 = vpop.permute.xlu0 %1084 }
 0x318   : > { %v1362_v1 = vadd.f32 %v1361_v20, %v1347_v27  ;;  %v1236_v2 = vmax.f32 %v4453_v29, 0.0  ;;  %v4460_v7 = vadd.f32 %v1188_v30, %v1035_v49 }
 0x319   : > { %v1239_v36 = vmax.f32 %v4458_v3, 0.0  ;;  %v1351_v40 = vmul.f32 %v1298_v56, %v1238_v31 }
 0x31a   : > { %v1349_v32 = vmul.f32 %v1288_v52, %v1236_v2  ;;  %v1363_v33 = vadd.f32 %v1362_v1, %v1348_v0  ;;  %v1237_v8 = vmax.f32 %v4460_v7, 0.0 }
 0x31b   : > { %v1352_v46 = vmul.f32 %v1303_v12, %v1239_v36 }
 0x31c   : > { %v1364_v35 = vadd.f32 %v1363_v33, %v1349_v32  ;;  %v1350_v37 = vmul.f32 %v1293_v54, %v1237_v8  ;;  %v3533_v9 = vpop.f32.mrb[24].mxu0 }
 0x31d   : > { %v1201_v39 = vpop.f32.mrb[25].mxu0  ;;  %v4471_v41 = vadd.f32 %v3533_v9, %v1060_v57 }
 0x31e   : > { %v1365_v10 = vadd.f32 %v1364_v35, %v1350_v37  ;;  %v4473_v42 = vadd.f32 %v1201_v39, %v1050_v55  ;;  %v3534_v43 = vpop.f32.mrb[26].mxu0  ;;  %v1328_v55 = vpop.permute.xlu1 %1327 }
 0x31f   : > { %v4475_v44 = vadd.f32 %v3534_v43, %v1065_v17  ;;  %v1204_v45 = vpop.f32.mrb[27].mxu0  ;;  %v1242_v51 = vmax.f32 %v4471_v41, 0.0  ;;  %v1338_v35 = vpop.permute.xlu0 %1337  ;;  %v3821_v41 = vld [vmem:[%s5171_s7] sm:$0xff]  }
 0x320   : > { %v1366_v47 = vadd.f32 %v1365_v10, %v1351_v40  ;;  %v1240_v48 = vmax.f32 %v4473_v42, 0.0  ;;  %v4480_v49 = vadd.f32 %v1204_v45, %v1055_v11  ;;  %3587 = vmatprep.mubr.bf16.mxu0 %v3821_v41 }
 0x321   : > { %v1243_v56 = vmax.f32 %v4475_v44, 0.0  ;;  %v1355_v11 = vmul.f32 %v1318_v26, %v1242_v51 }
 0x322   : > { %v1353_v52 = vmul.f32 %v1308_v4, %v1240_v48  ;;  %v1367_v53 = vadd.f32 %v1366_v47, %v1352_v46  ;;  %v1241_v54 = vmax.f32 %v4480_v49, 0.0  ;;  %v1333_v25 = vpop.permute.xlu1 %1332  ;;  %v4517_v46 = vld [vmem:[%s482_s22] sm:$0x1]  ;;  %s469_s22 = scalar_lea.vmem [#allocation4], %s4953_s21 }
 0x323   : > { %v1356_v23 = vmul.f32 %v1323_v38, %v1243_v56  ;;  %vm1264_vm0 = vcmp.gt.f32.partialorder %v4517_v46, 0.0  ;;  %s3035_s16 = sshll.u32 %s469_s22, 4  ;;  %s3036_s16 = int_to_ptr.vmem [resolvable:$true] %s3035_s16 }
 0x324   : > { %v1368_v57 = vadd.f32 %v1367_v53, %v1353_v52  ;;  %v1354_v12 = vmul.f32 %v1313_v14, %v1241_v54  ;;  %v3537_v5 = vpop.f32.mrb[28].mxu0  ;;  %s3869_s2 = scalar_lea.vmem %s3036_s16, 16  ;;  %p3876_p0 = scmp.lt.s32.totalorder %s3036_s16, %s3874_s17 }
 0x325   : > { %v1217_v58 = vpop.f32.mrb[29].mxu0  ;;  %v4491_v17 = vadd.f32 %v3537_v5, %v1080_v50  ;;  %p3870_p11 = scmp.ne.s32.totalorder %s3036_s16, %s3869_s2  ;;  %p3877_p1 = scmp.lt.s32.totalorder %s3875_s20, %s3869_s2 }
 0x326   : > { %v1369_v61 = vadd.f32 %v1368_v57, %v1354_v12  ;;  %v4493_v18 = vadd.f32 %v1217_v58, %v1070_v24  ;;  %v3538_v4 = vpop.f32.mrb[30].mxu0  ;;  %v1343_v9 = vpop.permute.xlu1 %1342 }
 0x327   : > { %v1220_v22 = vpop.f32.mrb[31].mxu0  ;;  %v4498_v14 = vadd.f32 %v3538_v4, %v1085_v21  ;;  %v1246_v26 = vmax.f32 %v4491_v17, 0.0  ;;  %v1445_v4 = vld [vmem:[%s5172_s8 + $0x8] sm:$0xff]  ;;  %v1446_v21 = vld [vmem:[%s5172_s8 + $0x10] sm:$0xff]  ;;  %p3871_p12 = pnand %p3870_p11, %p4079_p5  ;;  %p3878_p2 = por %p3877_p1, %p3876_p0 }
 0x328   : > { %v1370_v19 = vadd.f32 %v1369_v61, %v1355_v11  ;;  %v1244_v27 = vmax.f32 %v4493_v18, 0.0  ;;  %v4500_v20 = vadd.f32 %v1220_v22, %v1075_v34  ;;  %v1450_v22 = vld [vmem:[%s5172_s8 + $0x30] sm:$0xff] }
 0x329   : > { %v1247_v32 = vmax.f32 %v4498_v14, 0.0  ;;  %v1359_v34 = vmul.f32 %v1338_v35, %v1246_v26  ;;  %v3193_v35 = vld [vmem:[%s5175_s11 + $0x80] sm:$0xff]  ;;  %p3872_p13 = pneg %p3871_p12 }
 0x32a   : > { %v1357_v24 = vmul.f32 %v1328_v55, %v1244_v27  ;;  %v1371_v0 = vadd.f32 %v1370_v19, %v1356_v23  ;;  %v1245_v30 = vmax.f32 %v4500_v20, 0.0  ;;  %v1448_v23 = vld [vmem:[%s5172_s8 + $0x20] sm:$0xff] }
 0x32b   : > { %v1360_v38 = vmul.f32 %v1343_v9, %v1247_v32  ;;  %v1452_v19 = vld [vmem:[%s5172_s8 + $0x40] sm:$0xff]  ;;  %v1482_v9 = vld [vmem:[%s5174_s10 + $0x30] sm:$0xff]  ;;  %p3879_p3 = pnand %p3878_p2, %p3872_p13 }
 0x32c   : > { %v1372_v1 = vadd.f32 %v1371_v0, %v1357_v24  ;;  %v1358_v33 = vmul.f32 %v1333_v25, %v1245_v30  ;;  %v1454_v25 = vld [vmem:[%s5172_s8 + $0x50] sm:$0xff]  ;;  %v1456_v24 = vld [vmem:[%s5172_s8 + $0x60] sm:$0xff] }
 0x32d   : > { %v1458_v0 = vld [vmem:[%s5172_s8 + $0x70] sm:$0xff] }
 0x32e   : > { %v1373_v37 = vadd.f32 %v1372_v1, %v1358_v33  ;;  %v1476_v1 = vld [vmem:[%s5174_s10] sm:$0xff]  ;;  %v1478_v33 = vld [vmem:[%s5174_s10 + $0x10] sm:$0xff] }
 0x330   : > { %v1374_v39 = vadd.f32 %v1373_v37, %v1359_v34  ;;  %v1480_v34 = vld [vmem:[%s5174_s10 + $0x20] sm:$0xff]  ;;  %v1481_v37 = vld [vmem:[%s5174_s10 + $0x28] sm:$0xff] }
 0x332   : > { %v1375_v40 = vadd.f32 %v1374_v39, %v1360_v38  ;;  %v1483_v38 = vld [vmem:[%s5174_s10 + $0x38] sm:$0xff]  ;;  %v1484_v39 = vld [vmem:[%s5174_s10 + $0x40] sm:$0xff] }
 0x334   : > { %v1376_v10 = vrot.slane %v1375_v40, 4 }
 0x336   : > { %v1377_v43 = vadd.f32 %v1376_v10, %v1375_v40  ;;  %v1485_v40 = vld [vmem:[%s5174_s10 + $0x48] sm:$0xff]  ;;  %v1486_v10 = vld [vmem:[%s5174_s10 + $0x50] sm:$0xff] }
 0x338   : > { %v1378_v45 = vrot.slane %v1377_v43, 2 }
 0x33a   : > { %v1379_v47 = vadd.f32 %v1378_v45, %v1377_v43  ;;  %v1487_v43 = vld [vmem:[%s5174_s10 + $0x58] sm:$0xff]  ;;  %v1488_v45 = vld [vmem:[%s5174_s10 + $0x60] sm:$0xff] }
 0x33c   : > { %v1380_v50 = vrot.slane %v1379_v47, 1 }
 0x33e   : > { %v1381_v52 = vadd.f32 %v1380_v50, %v1379_v47  ;;  %v1489_v47 = vld [vmem:[%s5174_s10 + $0x68] sm:$0xff]  ;;  %v1490_v50 = vld [vmem:[%s5174_s10 + $0x70] sm:$0xff] }
 0x340   : > { %v1382_v53 = vsel %vm1264_vm0, %v1381_v52, -1e+30  ;;  %v1491_v52 = vld [vmem:[%s5174_s10 + $0x78] sm:$0xff] }
 0x341   : > { %v1384_v55 = vsel %vm1383_vm1, %v1382_v53, -inf }
 0x342   : > { %1385 = vmax.xlane.f32.xlu0 %v1384_v55 }
 0x3cf   : > { %v1386_v57 = vpop.xlane.xlu0 %1385 }
 0x3d0   : > { %v1387_v12 = vsub.f32 %v1382_v53, %v1386_v57  ;;  %v3207_v53 = vld [vmem:[%s5175_s11 + $0xf0] sm:$0xff] }
 0x3d2   : > { %v1388_v5 = vmul.f32 1.442695, %v1387_v12 }
 0x3d4   : > { %3853 = vpow2.f32 %v1388_v5 }
 0x3de   : > { %v3854_v58 = vpop.eup %3853 }
 0x3df   : > { %v1390_v11 = vsel %vm1264_vm0, %v3854_v58, 0.0 }
 0x3e0   : > { %v1391_v61 = vsel %vm1383_vm1, %v1390_v11, 0.0 }
 0x3e1   : > { %1392 = vadd.xlane.f32.xlu1 %v1391_v61  ;;  %v1444_v61 = vld [vmem:[%s5172_s8] sm:$0xff] }
 0x3f2   : > { %1628 = vperm.xlu1 %3796, %v1445_v4   ;;  %v1447_v4 = vld [vmem:[%s5172_s8 + $0x18] sm:$0xff] }
 0x3f6   : > { %1633 = vperm.xlu1 %3796, %v1446_v21   ;;  %v1449_v21 = vld [vmem:[%s5172_s8 + $0x28] sm:$0xff] }
 0x3fa   : > { %1643 = vperm.xlu1 %3796, %v1448_v23   ;;  %v1453_v23 = vld [vmem:[%s5172_s8 + $0x48] sm:$0xff] }
 0x3fe   : > { %1653 = vperm.xlu1 %3796, %v1450_v22   ;;  %v1455_v22 = vld [vmem:[%s5172_s8 + $0x58] sm:$0xff] }
 0x402   : > { %1663 = vperm.xlu1 %3796, %v1452_v19   ;;  %v1457_v19 = vld [vmem:[%s5172_s8 + $0x68] sm:$0xff] }
 0x406   : > { %1673 = vperm.xlu1 %3796, %v1454_v25   ;;  %v1459_v25 = vld [vmem:[%s5172_s8 + $0x78] sm:$0xff] }
 0x40a   : > { %1683 = vperm.xlu1 %3796, %v1456_v24   ;;  %v1477_v24 = vld [vmem:[%s5174_s10 + $0x8] sm:$0xff] }
 0x40e   : > { %1693 = vperm.xlu1 %3796, %v1458_v0   ;;  %v1479_v0 = vld [vmem:[%s5174_s10 + $0x18] sm:$0xff] }
 0x412   : > { %1872 = vperm.xlu1 %3796, %v1476_v1   ;;  %v3194_v1 = vld [vmem:[%s5175_s11 + $0x88] sm:$0xff] }
 0x416   : > { %1882 = vperm.xlu1 %3796, %v1478_v33   ;;  %v3195_v33 = vld [vmem:[%s5175_s11 + $0x90] sm:$0xff] }
 0x41a   : > { %2131 = vperm.xlu1 %3796, %v3193_v35   ;;  %v3196_v35 = vld [vmem:[%s5175_s11 + $0x98] sm:$0xff] }
 0x41e   : > { %1892 = vperm.xlu1 %3796, %v1480_v34   ;;  %v3197_v34 = vld [vmem:[%s5175_s11 + $0xa0] sm:$0xff] }
 0x422   : > { %1897 = vperm.xlu1 %3796, %v1481_v37   ;;  %v3198_v37 = vld [vmem:[%s5175_s11 + $0xa8] sm:$0xff] }
 0x426   : > { %1902 = vperm.xlu1 %3796, %v1482_v9   ;;  %v3199_v9 = vld [vmem:[%s5175_s11 + $0xb0] sm:$0xff] }
 0x42a   : > { %1907 = vperm.xlu1 %3796, %v1483_v38   ;;  %v3200_v38 = vld [vmem:[%s5175_s11 + $0xb8] sm:$0xff] }
 0x42e   : > { %1912 = vperm.xlu1 %3796, %v1484_v39   ;;  %v3201_v39 = vld [vmem:[%s5175_s11 + $0xc0] sm:$0xff] }
 0x432   : > { %1917 = vperm.xlu1 %3796, %v1485_v40   ;;  %v3202_v40 = vld [vmem:[%s5175_s11 + $0xc8] sm:$0xff] }
 0x436   : > { %1922 = vperm.xlu1 %3796, %v1486_v10   ;;  %v3203_v10 = vld [vmem:[%s5175_s11 + $0xd0] sm:$0xff] }
 0x43a   : > { %1927 = vperm.xlu1 %3796, %v1487_v43   ;;  %v3204_v43 = vld [vmem:[%s5175_s11 + $0xd8] sm:$0xff] }
 0x43e   : > { %1932 = vperm.xlu1 %3796, %v1488_v45   ;;  %v3205_v45 = vld [vmem:[%s5175_s11 + $0xe0] sm:$0xff] }
 0x442   : > { %1937 = vperm.xlu1 %3796, %v1489_v47   ;;  %v3206_v47 = vld [vmem:[%s5175_s11 + $0xe8] sm:$0xff] }
 0x446   : > { %1942 = vperm.xlu1 %3796, %v1490_v50   ;;  %v3208_v50 = vld [vmem:[%s5175_s11 + $0xf8] sm:$0xff] }
 0x44a   : > { %1947 = vperm.xlu1 %3796, %v1491_v52   ;;  %v1407_v52 = vlaneseq }
 0x44e   : > { %2201 = vperm.xlu1 %3796, %v3207_v53  }
 0x46e   : > { %v1393_v55 = vpop.xlane.xlu1 %1392 }
 0x46f   : > { %v1394_v57 = vadd.f32 1e-16, %v1393_v55 }
 0x471   : > { %3855 = vrcp.f32 %v1394_v57  ;;  %v1408_v57 = vshrl.u32 %v1407_v52, 7 }
 0x47b   : > { %v3856_v12 = vpop.eup %3855 }
 0x47c   : > { %v1396_v5 = vmul.f32 %v3856_v12, %v1390_v11  ;;  %v1451_v11 = vld [vmem:[%s5172_s8 + $0x38] sm:$0xff] }
 0x47e   : > { %v1397_v58 = vsel %vm1383_vm1, %v1396_v5, -inf }
 0x47f   : > { %1398 = vmax.xlane.f32.xlu0 %v1397_v58  ;;  %v4671_v58 = vsub.s32 0, %v1408_v57 }
 0x495   : > { %1623 = vperm.xlu0 %3795, %v1444_v61   ;;  %v3966_v61 = vmov 0.0  }
 0x499   : > { %1638 = vperm.xlu0 %3795, %v1447_v4  }
 0x49d   : > { %1648 = vperm.xlu0 %3795, %v1449_v21  }
 0x4a1   : > { %1658 = vperm.xlu0 %3795, %v1451_v11  }
 0x4a5   : > { %1668 = vperm.xlu0 %3795, %v1453_v23  }
 0x4a9   : > { %1678 = vperm.xlu0 %3795, %v1455_v22  }
 0x4ad   : > { %1688 = vperm.xlu0 %3795, %v1457_v19  }
 0x4b1   : > { %1698 = vperm.xlu0 %3795, %v1459_v25  }
 0x4b5   : > { %1877 = vperm.xlu0 %3795, %v1477_v24  }
 0x4b9   : > { %1887 = vperm.xlu0 %3795, %v1479_v0  }
 0x4bd   : > { %2136 = vperm.xlu0 %3795, %v3194_v1  }
 0x4c1   : > { %2141 = vperm.xlu0 %3795, %v3195_v33  }
 0x4c5   : > { %2146 = vperm.xlu0 %3795, %v3196_v35  }
 0x4c9   : > { %2151 = vperm.xlu0 %3795, %v3197_v34  }
 0x4cd   : > { %2156 = vperm.xlu0 %3795, %v3198_v37  }
 0x4d1   : > { %2161 = vperm.xlu0 %3795, %v3199_v9  }
 0x4d5   : > { %2166 = vperm.xlu0 %3795, %v3200_v38  }
 0x4d9   : > { %2171 = vperm.xlu0 %3795, %v3201_v39  }
 0x4dd   : > { %2176 = vperm.xlu0 %3795, %v3202_v40  }
 0x4e1   : > { %2181 = vperm.xlu0 %3795, %v3203_v10  }
 0x4e5   : > { %2186 = vperm.xlu0 %3795, %v3204_v43  }
 0x4e9   : > { %2191 = vperm.xlu0 %3795, %v3205_v45  }
 0x4ed   : > { %2196 = vperm.xlu0 %3795, %v3206_v47  }
 0x4f1   : > { %2206 = vperm.xlu0 %3795, %v3208_v50  }
 0x50c   : > { %v1399_v53 = vpop.xlane.xlu0 %1398 }
 0x50d   : > { %v3176_v55 = vadd.f32 -1e-07, %v1399_v53 }
 0x50f   : > { %v1401_v12 = vmin.f32 %v3176_v55, 0.001 }
 0x511   : > { %vm1402_vm2 = vcmp.gt.f32.partialorder %v1396_v5, %v1401_v12 }
 0x512   : > { %vm1403_vm3 = vmand %vm1402_vm2, %vm1264_vm0 }
 0x513   : > { %v4676_v4 = vsel %vm1403_vm3, 1.0, %v3966_v61 }
 0x514   : > { %v1405_v21 = vmul.f32 %v4676_v4, %v1396_v5  ;;  %vm2128_vm4 = vcmp.gt.f32.partialorder %v4676_v4, 0.0 }
 0x516   : > { %v1410_v11 = vrot.slane %v1405_v21, %v4671_v58 }
 0x518   : > { %v1412_v23 = vmul.f32 %v1410_v11, %v1232_v13  ;;  %v1413_v22 = vmul.f32 %v1410_v11, %v1233_v15  ;;  %v1414_v19 = vmul.f32 %v1410_v11, %v1234_v6  ;;  %v1415_v46 = vmul.f32 %v1410_v11, %v1235_v16 }
 0x519   : > { %v1416_v25 = vmul.f32 %v1410_v11, %v1236_v2  ;;  %v1417_v5 = vmul.f32 %v1410_v11, %v1237_v8  ;;  %v1418_v13 = vmul.f32 %v1410_v11, %v1238_v31  ;;  %v1419_v59 = vmul.f32 %v1410_v11, %v1239_v36 }
 0x51a   : > { %v1492_v24 = vpack.c.bf16 %v1413_v22, %v1412_v23  ;;  %v1493_v0 = vpack.c.bf16 %v1415_v46, %v1414_v19  ;;  %v1420_v62 = vmul.f32 %v1410_v11, %v1240_v48  ;;  %v1421_v63 = vmul.f32 %v1410_v11, %v1241_v54 }
 0x51b   : > { %v1494_v60 = vpack.c.bf16 %v1417_v5, %v1416_v25  ;;  %v1495_v6 = vpack.c.bf16 %v1419_v59, %v1418_v13  ;;  %v1422_v16 = vmul.f32 %v1410_v11, %v1242_v51  ;;  %v1423_v28 = vmul.f32 %v1410_v11, %v1243_v56 }
 0x51c   : > { %3555 = vmatprep.mubr.bf16.mxu1 %v1492_v24  ;;  %v1496_v15 = vpack.c.bf16 %v1421_v63, %v1420_v62  ;;  %v1424_v29 = vmul.f32 %v1410_v11, %v1244_v27  ;;  %v1425_v2 = vmul.f32 %v1410_v11, %v1245_v30  ;;  %v1426_v31 = vmul.f32 %v1410_v11, %v1246_v26  ;;  %v3861_v24 = vld [vmem:[%s4097_s24] sm:$0xff]  }
 0x51d   : > { %3556 = vmatmul.mubr.bf16.vlgmr.msra.gmra.mrb[16].mxu1 %v1493_v0  ;;  %v1497_v3 = vpack.c.bf16 %v1423_v28, %v1422_v16  ;;  %v1427_v8 = vmul.f32 %v1410_v11, %v1247_v32  ;;  %v3862_v0 = vld [vmem:[%s4097_s24 + $0x8] sm:$0xff]  }
 0x51e   : > { %3559 = vmatprep.mubr.bf16.mxu1 %v1494_v60  ;;  %v1498_v7 = vpack.c.bf16 %v1425_v2, %v1424_v29  ;;  %v3824_v60 = vld [vmem:[%s5171_s7 + $0x18] sm:$0xff]  }
 0x51f   : > { %v1499_v36 = vpack.c.bf16 %v1427_v8, %v1426_v31 }
 0x525   : > { %3560 = vmatmul.mubr.bf16.gmra.mrb[20].mxu1 %v1495_v6  ;;  %v3827_v6 = vld [vmem:[%s5171_s7 + $0x30] sm:$0xff]  }
 0x526   : > { %3563 = vmatprep.mubr.bf16.mxu1 %v1496_v15  ;;  %v3865_v15 = vld [vmem:[%s4097_s24 + $0x20] sm:$0xff]  }
 0x52d   : > { %3564 = vmatmul.mubr.bf16.gmra.mrb[24].mxu1 %v1497_v3  ;;  %v3829_v3 = vld [vmem:[%s5173_s9] sm:$0xff]  }
 0x52e   : > { %3567 = vmatprep.mubr.bf16.mxu1 %v1498_v7  ;;  %v1629_v7 = vpop.permute.xlu1 %1628 }
 0x535   : > { %3568 = vmatmul.mubr.bf16.gmra.mrb[28].mxu1 %v1499_v36 }
 0x536   : > { %3619 = vmatprep.mubr.bf16.mxu1 %v3829_v3 }
 0x5f0   : > { %v3557_v42 = vpop.f32.mrb[16].mxu1 }
 0x5f1   : > { %v1534_v44 = vpop.f32.mrb[17].mxu1  ;;  %v1599_v49 = vadd.f32 %v3557_v42, %v1414_v19 }
 0x5f2   : > { %v3558_v48 = vpop.f32.mrb[18].mxu1  ;;  %v1597_v56 = vadd.f32 %v1534_v44, %v1412_v23 }
 0x5f3   : > { %v1600_v51 = vadd.f32 %v3558_v48, %v1415_v46  ;;  %v1537_v54 = vpop.f32.mrb[19].mxu1 }
 0x5f4   : > { %v1598_v18 = vadd.f32 %v1537_v54, %v1413_v22 }
 0x5f5   : > { %v1614_v17 = vpack.c.bf16 %v1600_v51, %v1599_v49 }
 0x5f6   : > { %v1613_v27 = vpack.c.bf16 %v1598_v18, %v1597_v56 }
 0x5f8   : > { %v3561_v20 = vpop.f32.mrb[20].mxu1  ;;  %3571 = vmatprep.subr.bf16.mxu0 %v1613_v27 }
 0x5f9   : > { %v1550_v14 = vpop.f32.mrb[21].mxu1  ;;  %3572 = vmatpush3.bf16.msra.mxu0 %v1613_v27  ;;  %v1603_v30 = vadd.f32 %v3561_v20, %v1418_v13  ;;  %v3825_v13 = vld [vmem:[%s5171_s7 + $0x20] sm:$0xff]  }
 0x5fa   : > { %v3562_v26 = vpop.f32.mrb[22].mxu1  ;;  %3573 = vmatprep.subr.bf16.mxu0 %v1614_v17  ;;  %v1601_v33 = vadd.f32 %v1550_v14, %v1416_v25  ;;  %v3822_v25 = vld [vmem:[%s5171_s7 + $0x8] sm:$0xff]  }
 0x5fb   : > { %v1604_v32 = vadd.f32 %v3562_v26, %v1419_v59  ;;  %v1553_v1 = vpop.f32.mrb[23].mxu1  ;;  %v3863_v59 = vld [vmem:[%s4097_s24 + $0x10] sm:$0xff]  }
 0x5fc   : > { %v1602_v35 = vadd.f32 %v1553_v1, %v1417_v5  ;;  %v3823_v5 = vld [vmem:[%s5171_s7 + $0x10] sm:$0xff]  }
 0x5fd   : > { %v1616_v34 = vpack.c.bf16 %v1604_v32, %v1603_v30  ;;  %3574 = vmatpush3.bf16.msra.mxu0 %v1614_v17 }
 0x5fe   : > { %v1615_v37 = vpack.c.bf16 %v1602_v35, %v1601_v33 }
 0x600   : > { %v3565_v9 = vpop.f32.mrb[24].mxu1  ;;  %3575 = vmatprep.subr.bf16.mxu0 %v1615_v37 }
 0x601   : > { %v1566_v38 = vpop.f32.mrb[25].mxu1  ;;  %3576 = vmatpush3.bf16.msra.mxu0 %v1615_v37  ;;  %v1607_v40 = vadd.f32 %v3565_v9, %v1422_v16  ;;  %v3866_v16 = vld [vmem:[%s4097_s24 + $0x28] sm:$0xff]  }
 0x602   : > { %v3566_v39 = vpop.f32.mrb[26].mxu1  ;;  %3577 = vmatprep.subr.bf16.mxu0 %v1616_v34  ;;  %v1605_v45 = vadd.f32 %v1566_v38, %v1420_v62  ;;  %v3864_v62 = vld [vmem:[%s4097_s24 + $0x18] sm:$0xff]  }
 0x603   : > { %v1608_v10 = vadd.f32 %v3566_v39, %v1423_v28  ;;  %v1569_v43 = vpop.f32.mrb[27].mxu1  ;;  %v3828_v28 = vld [vmem:[%s5171_s7 + $0x38] sm:$0xff]  }
 0x604   : > { %v1606_v47 = vadd.f32 %v1569_v43, %v1421_v63  ;;  %v3826_v63 = vld [vmem:[%s5171_s7 + $0x28] sm:$0xff]  }
 0x605   : > { %v1618_v50 = vpack.c.bf16 %v1608_v10, %v1607_v40  ;;  %3578 = vmatpush3.bf16.msra.mxu0 %v1616_v34 }
 0x606   : > { %v1617_v52 = vpack.c.bf16 %v1606_v47, %v1605_v45 }
 0x608   : > { %v3569_v53 = vpop.f32.mrb[28].mxu1  ;;  %3579 = vmatprep.subr.bf16.mxu0 %v1617_v52 }
 0x609   : > { %v1582_v55 = vpop.f32.mrb[29].mxu1  ;;  %3580 = vmatpush3.bf16.msra.mxu0 %v1617_v52  ;;  %v1611_v12 = vadd.f32 %v3569_v53, %v1426_v31  ;;  %v1624_v31 = vpop.permute.xlu0 %1623 }
 0x60a   : > { %v3570_v57 = vpop.f32.mrb[30].mxu1  ;;  %3581 = vmatprep.subr.bf16.mxu0 %v1618_v50  ;;  %v1609_v23 = vadd.f32 %v1582_v55, %v1424_v29  ;;  %v3867_v29 = vld [vmem:[%s4097_s24 + $0x30] sm:$0xff]  }
 0x60b   : > { %v1612_v21 = vadd.f32 %v3570_v57, %v1427_v8  ;;  %v1585_v11 = vpop.f32.mrb[31].mxu1  ;;  %v1634_v8 = vpop.permute.xlu1 %1633 }
 0x60c   : > { %v1610_v22 = vadd.f32 %v1585_v11, %v1425_v2  ;;  %v3868_v2 = vld [vmem:[%s4097_s24 + $0x38] sm:$0xff]  }
 0x60d   : > { %v1620_v19 = vpack.c.bf16 %v1612_v21, %v1611_v12  ;;  %3582 = vmatpush3.bf16.msra.mxu0 %v1618_v50  ;;  %v1639_v36 = vpop.permute.xlu0 %1638 }
 0x60e   : > { %v1619_v46 = vpack.c.bf16 %v1610_v22, %v1609_v23 }
 0x60f   : > { %v1644_v41 = vpop.permute.xlu1 %1643 }
 0x610   : > { %3583 = vmatprep.subr.bf16.mxu0 %v1619_v46 }
 0x611   : > { %3584 = vmatpush3.bf16.msra.mxu0 %v1619_v46  ;;  %v1649_v42 = vpop.permute.xlu0 %1648 }
 0x612   : > { %3585 = vmatprep.subr.bf16.mxu0 %v1620_v19 }
 0x613   : > { %v1654_v44 = vpop.permute.xlu1 %1653 }
 0x615   : > { %3586 = vmatpush3.bf16.msra.mxu0 %v1620_v19  ;;  %v1659_v54 = vpop.permute.xlu0 %1658 }
 0x616   : > { %3635 = vmatprep.subr.bf16.mxu0 %v3861_v24 }
 0x617   : > { %v1664_v30 = vpop.permute.xlu1 %1663 }
 0x618   : > { %3588 = vmatmul.mubr.bf16.vlgmr.msra.gmra.mrb[32].mxu0 %v3822_v25 }
 0x619   : > { %3591 = vmatprep.mubr.bf16.mxu0 %v3823_v5  ;;  %3636 = vmatpush3.bf16.msra.mxu0 %v3861_v24  ;;  %v1669_v35 = vpop.permute.xlu0 %1668 }
 0x61a   : > { %3637 = vmatprep.subr.bf16.mxu0 %v3862_v0 }
 0x61b   : > { %v1674_v45 = vpop.permute.xlu1 %1673 }
 0x61d   : > { %3638 = vmatpush3.bf16.msra.mxu0 %v3862_v0  ;;  %v1679_v53 = vpop.permute.xlu0 %1678 }
 0x61e   : > { %3639 = vmatprep.subr.bf16.mxu0 %v3863_v59 }
 0x61f   : > { %v1684_v19 = vpop.permute.xlu1 %1683 }
 0x620   : > { %3592 = vmatmul.mubr.bf16.gmra.mrb[36].mxu0 %v3824_v60 }
 0x621   : > { %3595 = vmatprep.mubr.bf16.mxu0 %v3825_v13  ;;  %3640 = vmatpush3.bf16.msra.mxu0 %v3863_v59  ;;  %v1689_v0 = vpop.permute.xlu0 %1688 }
 0x622   : > { %3641 = vmatprep.subr.bf16.mxu0 %v3864_v62 }
 0x625   : > { %3642 = vmatpush3.bf16.msra.mxu0 %v3864_v62  ;;  %v1699_v3 = vpop.permute.xlu0 %1698 }
 0x626   : > { %3643 = vmatprep.subr.bf16.mxu0 %v3865_v15 }
 0x628   : > { %3596 = vmatmul.mubr.bf16.gmra.mrb[40].mxu0 %v3826_v63 }
 0x629   : > { %3599 = vmatprep.mubr.bf16.mxu0 %v3827_v6  ;;  %3644 = vmatpush3.bf16.msra.mxu0 %v3865_v15  ;;  %v1694_v15 = vpop.permute.xlu1 %1693 }
 0x62a   : > { %3645 = vmatprep.subr.bf16.mxu0 %v3866_v16 }
 0x62d   : > { %3646 = vmatpush3.bf16.msra.mxu0 %v3866_v16 }
 0x62e   : > { %3647 = vmatprep.subr.bf16.mxu0 %v3867_v29 }
 0x630   : > { %3600 = vmatmul.mubr.bf16.gmra.mrb[44].mxu0 %v3828_v28 }
 0x631   : > { %3648 = vmatpush3.bf16.msra.mxu0 %v3867_v29 }
 0x632   : > { %3649 = vmatprep.subr.bf16.mxu0 %v3868_v2 }
 0x635   : > { %3650 = vmatpush3.bf16.msra.mxu0 %v3868_v2 }
 0x6eb   : > { %v3589_v48 = vpop.f32.mrb[32].mxu0 }
 0x6ec   : > { %v1792_v49 = vadd.f32 %v3589_v48, %v1634_v8  ;;  %v1783_v51 = vpop.f32.mrb[33].mxu0 }
 0x6ed   : > { %v1784_v56 = vadd.f32 %v1783_v51, %v1624_v31  ;;  %v3590_v18 = vpop.f32.mrb[34].mxu0 }
 0x6ee   : > { %v1795_v17 = vadd.f32 %v3590_v18, %v1639_v36  ;;  %v1786_v27 = vpop.f32.mrb[35].mxu0  ;;  %v1848_v14 = vmax.f32 %v1792_v49, 0.0  ;;  %v3831_v18 = vld [vmem:[%s5173_s9 + $0x10] sm:$0xff]  }
 0x6ef   : > { %v1787_v20 = vadd.f32 %v1786_v27, %v1629_v7  ;;  %v1846_v32 = vmax.f32 %v1784_v56, 0.0  ;;  %v3830_v56 = vld [vmem:[%s5173_s9 + $0x8] sm:$0xff]   ;;  %v3833_v27 = vld [vmem:[%s5173_s9 + $0x20] sm:$0xff]  }
 0x6f0   : > { %v1849_v26 = vmax.f32 %v1795_v17, 0.0  ;;  %v3832_v17 = vld [vmem:[%s5173_s9 + $0x18] sm:$0xff]  }
 0x6f1   : > { %v1847_v1 = vmax.f32 %v1787_v20, 0.0  ;;  %v3834_v20 = vld [vmem:[%s5173_s9 + $0x28] sm:$0xff]  }
 0x6f2   : > { %v1863_v33 = vpack.c.bf16 %v1849_v26, %v1848_v14  ;;  %v3835_v14 = vld [vmem:[%s5173_s9 + $0x30] sm:$0xff]   ;;  %v3836_v26 = vld [vmem:[%s5173_s9 + $0x38] sm:$0xff]  }
 0x6f3   : > { %v1862_v34 = vpack.c.bf16 %v1847_v1, %v1846_v32  ;;  %v3593_v37 = vpop.f32.mrb[36].mxu0  ;;  %v1878_v32 = vpop.permute.xlu0 %1877 }
 0x6f4   : > { %v1808_v9 = vadd.f32 %v3593_v37, %v1654_v44  ;;  %v1799_v38 = vpop.f32.mrb[37].mxu0 }
 0x6f5   : > { %v1800_v39 = vadd.f32 %v1799_v38, %v1644_v41  ;;  %v3594_v40 = vpop.f32.mrb[38].mxu0  ;;  %3603 = vmatprep.subr.bf16.mxu1 %v1862_v34 }
 0x6f6   : > { %v1811_v10 = vadd.f32 %v3594_v40, %v1659_v54  ;;  %v1802_v43 = vpop.f32.mrb[39].mxu0  ;;  %3604 = vmatpush3.bf16.msra.mxu1 %v1862_v34  ;;  %v1852_v50 = vmax.f32 %v1808_v9, 0.0 }
 0x6f7   : > { %v1803_v47 = vadd.f32 %v1802_v43, %v1649_v42  ;;  %3605 = vmatprep.subr.bf16.mxu1 %v1863_v33  ;;  %v1850_v55 = vmax.f32 %v1800_v39, 0.0 }
 0x6f8   : > { %v1853_v52 = vmax.f32 %v1811_v10, 0.0 }
 0x6f9   : > { %v1851_v57 = vmax.f32 %v1803_v47, 0.0 }
 0x6fa   : > { %v1865_v12 = vpack.c.bf16 %v1853_v52, %v1852_v50  ;;  %3606 = vmatpush3.bf16.msra.mxu1 %v1863_v33  ;;  %v1888_v33 = vpop.permute.xlu0 %1887 }
 0x6fb   : > { %v1864_v21 = vpack.c.bf16 %v1851_v57, %v1850_v55  ;;  %v3597_v11 = vpop.f32.mrb[40].mxu0 }
 0x6fc   : > { %v1824_v23 = vadd.f32 %v3597_v11, %v1674_v45  ;;  %v1815_v22 = vpop.f32.mrb[41].mxu0 }
 0x6fd   : > { %v1816_v46 = vadd.f32 %v1815_v22, %v1664_v30  ;;  %v3598_v25 = vpop.f32.mrb[42].mxu0  ;;  %3607 = vmatprep.subr.bf16.mxu1 %v1864_v21  ;;  %v1873_v30 = vpop.permute.xlu1 %1872 }
 0x6fe   : > { %v1827_v5 = vadd.f32 %v3598_v25, %v1679_v53  ;;  %v1818_v24 = vpop.f32.mrb[43].mxu0  ;;  %3608 = vmatpush3.bf16.msra.mxu1 %v1864_v21  ;;  %v1856_v13 = vmax.f32 %v1824_v23, 0.0  ;;  %v2137_v34 = vpop.permute.xlu0 %2136 }
 0x6ff   : > { %v1819_v60 = vadd.f32 %v1818_v24, %v1669_v35  ;;  %3609 = vmatprep.subr.bf16.mxu1 %v1865_v12  ;;  %v1854_v62 = vmax.f32 %v1816_v46, 0.0 }
 0x700   : > { %v1857_v59 = vmax.f32 %v1827_v5, 0.0 }
 0x701   : > { %v1855_v63 = vmax.f32 %v1819_v60, 0.0  ;;  %v1883_v1 = vpop.permute.xlu1 %1882 }
 0x702   : > { %v1867_v6 = vpack.c.bf16 %v1857_v59, %v1856_v13  ;;  %3610 = vmatpush3.bf16.msra.mxu1 %v1865_v12  ;;  %v2142_v9 = vpop.permute.xlu0 %2141 }
 0x703   : > { %v1866_v16 = vpack.c.bf16 %v1855_v63, %v1854_v62  ;;  %v3601_v28 = vpop.f32.mrb[44].mxu0 }
 0x704   : > { %v1840_v29 = vadd.f32 %v3601_v28, %v1694_v15  ;;  %v1831_v2 = vpop.f32.mrb[45].mxu0 }
 0x705   : > { %v1832_v7 = vadd.f32 %v1831_v2, %v1684_v19  ;;  %v3602_v31 = vpop.f32.mrb[46].mxu0  ;;  %3611 = vmatprep.subr.bf16.mxu1 %v1866_v16  ;;  %v2132_v35 = vpop.permute.xlu1 %2131 }
 0x706   : > { %v1843_v8 = vadd.f32 %v3602_v31, %v1699_v3  ;;  %v1834_v36 = vpop.f32.mrb[47].mxu0  ;;  %3612 = vmatpush3.bf16.msra.mxu1 %v1866_v16  ;;  %v1860_v42 = vmax.f32 %v1840_v29, 0.0  ;;  %v2147_v39 = vpop.permute.xlu0 %2146 }
 0x707   : > { %v1835_v41 = vadd.f32 %v1834_v36, %v1689_v0  ;;  %3613 = vmatprep.subr.bf16.mxu1 %v1867_v6  ;;  %v1858_v48 = vmax.f32 %v1832_v7, 0.0 }
 0x708   : > { %v1861_v44 = vmax.f32 %v1843_v8, 0.0 }
 0x709   : > { %v1859_v49 = vmax.f32 %v1835_v41, 0.0  ;;  %v1893_v37 = vpop.permute.xlu1 %1892 }
 0x70a   : > { %v1869_v51 = vpack.c.bf16 %v1861_v44, %v1860_v42  ;;  %3614 = vmatpush3.bf16.msra.mxu1 %v1867_v6  ;;  %v2152_v10 = vpop.permute.xlu0 %2151 }
 0x70b   : > { %v1868_v54 = vpack.c.bf16 %v1859_v49, %v1858_v48 }
 0x70d   : > { %3615 = vmatprep.subr.bf16.mxu1 %v1868_v54  ;;  %v1898_v38 = vpop.permute.xlu1 %1897 }
 0x70e   : > { %3616 = vmatpush3.bf16.msra.mxu1 %v1868_v54  ;;  %v2157_v45 = vpop.permute.xlu0 %2156 }
 0x70f   : > { %3617 = vmatprep.subr.bf16.mxu1 %v1869_v51 }
 0x711   : > { %v1903_v40 = vpop.permute.xlu1 %1902 }
 0x712   : > { %3618 = vmatpush3.bf16.msra.mxu1 %v1869_v51  ;;  %v2162_v50 = vpop.permute.xlu0 %2161 }
 0x715   : > { %3620 = vmatmul.mubr.bf16.vlgmr.msra.gmra.mrb[32].mxu1 %v3830_v56  ;;  %v1908_v43 = vpop.permute.xlu1 %1907 }
 0x716   : > { %3623 = vmatprep.mubr.bf16.mxu1 %v3831_v18  ;;  %v2167_v53 = vpop.permute.xlu0 %2166 }
 0x719   : > { %v1913_v47 = vpop.permute.xlu1 %1912 }
 0x71a   : > { %v2172_v57 = vpop.permute.xlu0 %2171 }
 0x71d   : > { %3624 = vmatmul.mubr.bf16.gmra.mrb[36].mxu1 %v3832_v17  ;;  %v1918_v52 = vpop.permute.xlu1 %1917 }
 0x71e   : > { %3627 = vmatprep.mubr.bf16.mxu1 %v3833_v27  ;;  %v2177_v0 = vpop.permute.xlu0 %2176 }
 0x721   : > { %v1923_v55 = vpop.permute.xlu1 %1922 }
 0x722   : > { %v2182_v31 = vpop.permute.xlu0 %2181 }
 0x725   : > { %3628 = vmatmul.mubr.bf16.gmra.mrb[40].mxu1 %v3834_v20  ;;  %v1928_v19 = vpop.permute.xlu1 %1927 }
 0x726   : > { %3631 = vmatprep.mubr.bf16.mxu1 %v3835_v14 }
 0x729   : > { %v1933_v15 = vpop.permute.xlu1 %1932 }
 0x72d   : > { %3632 = vmatmul.mubr.bf16.gmra.mrb[44].mxu1 %v3836_v26  ;;  %v1938_v18 = vpop.permute.xlu1 %1937  ;;  %v2187_v26 = vpop.permute.xlu0 %2186 }
 0x7e8   : > { %v3621_v12 = vpop.f32.mrb[32].mxu1 }
 0x7e9   : > { %v2032_v21 = vpop.f32.mrb[33].mxu1  ;;  %v4768_v11 = vadd.f32 %v3621_v12, %v1883_v1  ;;  %v2192_v12 = vpop.permute.xlu0 %2191 }
 0x7ea   : > { %v4770_v23 = vadd.f32 %v2032_v21, %v1873_v30  ;;  %v3622_v22 = vpop.f32.mrb[34].mxu1 }
 0x7eb   : > { %v4772_v46 = vadd.f32 %v3622_v22, %v1888_v33  ;;  %v2035_v25 = vpop.f32.mrb[35].mxu1  ;;  %v2097_v60 = vmax.f32 %v4768_v11, 0.0 }
 0x7ec   : > { %v2095_v5 = vmax.f32 %v4770_v23, 0.0  ;;  %v4775_v24 = vadd.f32 %v2035_v25, %v1878_v32 }
 0x7ed   : > { %v2098_v59 = vmax.f32 %v4772_v46, 0.0  ;;  %v2211_v28 = vmul.f32 %v2142_v9, %v2097_v60 }
 0x7ee   : > { %v2096_v13 = vmax.f32 %v4775_v24, 0.0  ;;  %v2209_v62 = vmul.f32 %v2132_v35, %v2095_v5 }
 0x7ef   : > { %v2212_v8 = vmul.f32 %v2147_v39, %v2098_v59 }
 0x7f0   : > { %v2210_v63 = vmul.f32 %v2137_v34, %v2096_v13  ;;  %v3625_v6 = vpop.f32.mrb[36].mxu1 }
 0x7f1   : > { %v2048_v16 = vpop.f32.mrb[37].mxu1  ;;  %v4786_v2 = vadd.f32 %v3625_v6, %v1903_v40 }
 0x7f2   : > { %v2225_v29 = vadd.f32 %v2210_v63, %v2209_v62  ;;  %v4788_v3 = vadd.f32 %v2048_v16, %v1893_v37  ;;  %v3626_v7 = vpop.f32.mrb[38].mxu1 }
 0x7f3   : > { %v2051_v36 = vpop.f32.mrb[39].mxu1  ;;  %v4793_v44 = vadd.f32 %v3626_v7, %v1908_v43  ;;  %v2101_v49 = vmax.f32 %v4786_v2, 0.0  ;;  %v1943_v43 = vpop.permute.xlu1 %1942 }
 0x7f4   : > { %v2226_v41 = vadd.f32 %v2225_v29, %v2211_v28  ;;  %v2099_v42 = vmax.f32 %v4788_v3, 0.0  ;;  %v4795_v48 = vadd.f32 %v2051_v36, %v1898_v38 }
 0x7f5   : > { %v2102_v27 = vmax.f32 %v4793_v44, 0.0  ;;  %v2215_v32 = vmul.f32 %v2162_v50, %v2101_v49 }
 0x7f6   : > { %v2213_v51 = vmul.f32 %v2152_v10, %v2099_v42  ;;  %v2227_v54 = vadd.f32 %v2226_v41, %v2212_v8  ;;  %v2100_v56 = vmax.f32 %v4795_v48, 0.0  ;;  %v2197_v41 = vpop.permute.xlu0 %2196 }
 0x7f7   : > { %v2216_v38 = vmul.f32 %v2167_v53, %v2102_v27  ;;  %v1948_v16 = vpop.permute.xlu1 %1947 }
 0x7f8   : > { %v2228_v17 = vadd.f32 %v2227_v54, %v2213_v51  ;;  %v2214_v20 = vmul.f32 %v2157_v45, %v2100_v56  ;;  %v3629_v14 = vpop.f32.mrb[40].mxu1 }
 0x7f9   : > { %v2064_v30 = vpop.f32.mrb[41].mxu1  ;;  %v4806_v33 = vadd.f32 %v3629_v14, %v1923_v55 }
 0x7fa   : > { %v2229_v1 = vadd.f32 %v2228_v17, %v2214_v20  ;;  %v4808_v35 = vadd.f32 %v2064_v30, %v1913_v47  ;;  %v3630_v34 = vpop.f32.mrb[42].mxu1 }
 0x7fb   : > { %v4810_v37 = vadd.f32 %v3630_v34, %v1928_v19  ;;  %v2067_v9 = vpop.f32.mrb[43].mxu1  ;;  %v2105_v45 = vmax.f32 %v4806_v33, 0.0  ;;  %v3837_v33 = vld [vmem:[%s5171_s7 + $0x40] sm:$0xff]  }
 0x7fc   : > { %v2230_v39 = vadd.f32 %v2229_v1, %v2215_v32  ;;  %v2103_v40 = vmax.f32 %v4808_v35, 0.0  ;;  %v4815_v10 = vadd.f32 %v2067_v9, %v1918_v52  ;;  %v2207_v32 = vpop.permute.xlu0 %2206  ;;  %3683 = vmatprep.mubr.bf16.mxu1 %v3837_v33 }
 0x7fd   : > { %v2106_v21 = vmax.f32 %v4810_v37, 0.0  ;;  %v2219_v52 = vmul.f32 %v2182_v31, %v2105_v45 }
 0x7fe   : > { %v2217_v50 = vmul.f32 %v2172_v57, %v2103_v40  ;;  %v2231_v47 = vadd.f32 %v2230_v39, %v2216_v38  ;;  %v2104_v55 = vmax.f32 %v4815_v10, 0.0 }
 0x7ff   : > { %v2220_v28 = vmul.f32 %v2187_v26, %v2106_v21  ;;  %v2202_v26 = vpop.permute.xlu1 %2201 }
 0x800   : > { %v2232_v22 = vadd.f32 %v2231_v47, %v2217_v50  ;;  %v2218_v53 = vmul.f32 %v2177_v0, %v2104_v55  ;;  %v3633_v19 = vpop.f32.mrb[44].mxu1 }
 0x801   : > { %v2080_v25 = vpop.f32.mrb[45].mxu1  ;;  %v4826_v63 = vadd.f32 %v3633_v19, %v1943_v43  ;;  %v3226_v19 = vld [vmem:[%s5172_s8 + $0x80] sm:$0xff] }
 0x802   : > { %v2233_v62 = vadd.f32 %v2232_v22, %v2218_v53  ;;  %v4828_v6 = vadd.f32 %v2080_v25, %v1933_v15  ;;  %v3634_v57 = vpop.f32.mrb[46].mxu1  ;;  %v3228_v25 = vld [vmem:[%s5172_s8 + $0x90] sm:$0xff] }
 0x803   : > { %v2083_v29 = vpop.f32.mrb[47].mxu1  ;;  %v4833_v0 = vadd.f32 %v3634_v57, %v1948_v16  ;;  %v2109_v31 = vmax.f32 %v4826_v63, 0.0  ;;  %v3233_v57 = vld [vmem:[%s5172_s8 + $0xb8] sm:$0xff]  ;;  %v3235_v16 = vld [vmem:[%s5172_s8 + $0xc8] sm:$0xff] }
 0x804   : > { %v2234_v7 = vadd.f32 %v2233_v62, %v2219_v52  ;;  %v2107_v8 = vmax.f32 %v4828_v6, 0.0  ;;  %v4835_v36 = vadd.f32 %v2083_v29, %v1938_v18  ;;  %v3229_v52 = vld [vmem:[%s5172_s8 + $0x98] sm:$0xff]  ;;  %v3231_v62 = vld [vmem:[%s5172_s8 + $0xa8] sm:$0xff] }
 0x805   : > { %v2110_v20 = vmax.f32 %v4833_v0, 0.0  ;;  %v2223_v18 = vmul.f32 %v2202_v26, %v2109_v31  ;;  %v3239_v29 = vld [vmem:[%s5172_s8 + $0xe8] sm:$0xff]  ;;  %v3269_v26 = vld [vmem:[%s5174_s10 + $0xd8] sm:$0xff] }
 0x806   : > { %v2221_v15 = vmul.f32 %v2192_v12, %v2107_v8  ;;  %v2235_v51 = vadd.f32 %v2234_v7, %v2220_v28  ;;  %v2108_v54 = vmax.f32 %v4835_v36, 0.0  ;;  %v3237_v28 = vld [vmem:[%s5172_s8 + $0xd8] sm:$0xff] }
 0x807   : > { %v2224_v1 = vmul.f32 %v2207_v32, %v2110_v20  ;;  %v3241_v7 = vld [vmem:[%s5172_s8 + $0xf8] sm:$0xff] }
 0x808   : > { %v2236_v17 = vadd.f32 %v2235_v51, %v2221_v15  ;;  %v2222_v14 = vmul.f32 %v2197_v41, %v2108_v54  ;;  %v3259_v41 = vld [vmem:[%s5174_s10 + $0x88] sm:$0xff]  ;;  %v3261_v15 = vld [vmem:[%s5174_s10 + $0x98] sm:$0xff] }
 0x809   : > { %v3263_v51 = vld [vmem:[%s5174_s10 + $0xa8] sm:$0xff] }
 0x80a   : > { %v2237_v30 = vadd.f32 %v2236_v17, %v2222_v14  ;;  %v3265_v17 = vld [vmem:[%s5174_s10 + $0xb8] sm:$0xff]  ;;  %v3267_v14 = vld [vmem:[%s5174_s10 + $0xc8] sm:$0xff] }
 0x80c   : > { %v2238_v34 = vadd.f32 %v2237_v30, %v2223_v18  ;;  %v3271_v18 = vld [vmem:[%s5174_s10 + $0xe8] sm:$0xff]  ;;  %v3273_v30 = vld [vmem:[%s5174_s10 + $0xf8] sm:$0xff] }
 0x80e   : > { %v2239_v9 = vadd.f32 %v2238_v34, %v2224_v1 }
 0x810   : > { %v2240_v38 = vrot.slane %v2239_v9, 4 }
 0x812   : > { %v2241_v39 = vadd.f32 %v2240_v38, %v2239_v9 }
 0x814   : > { %v2242_v43 = vrot.slane %v2241_v39, 2 }
 0x816   : > { %v2243_v50 = vadd.f32 %v2242_v43, %v2241_v39 }
 0x818   : > { %v2244_v47 = vrot.slane %v2243_v50, 1 }
 0x81a   : > { %v2245_v12 = vadd.f32 %v2244_v47, %v2243_v50 }
 0x81c   : > { %v2246_v22 = vsel %vm2128_vm4, %v2245_v12, -1e+30 }
 0x81d   : > { %v2247_v53 = vsel %vm1383_vm1, %v2246_v22, -inf }
 0x81e   : > { %2248 = vmax.xlane.f32.xlu1 %v2247_v53 }
 0x82f   : > { %2490 = vperm.xlu1 %3796, %v3226_v19   ;;  %v3230_v19 = vld [vmem:[%s5172_s8 + $0xa0] sm:$0xff] }
 0x833   : > { %2500 = vperm.xlu1 %3796, %v3228_v25   ;;  %v3232_v25 = vld [vmem:[%s5172_s8 + $0xb0] sm:$0xff] }
 0x837   : > { %2505 = vperm.xlu1 %3796, %v3229_v52   ;;  %v3234_v52 = vld [vmem:[%s5172_s8 + $0xc0] sm:$0xff] }
 0x83b   : > { %2515 = vperm.xlu1 %3796, %v3231_v62   ;;  %v3236_v62 = vld [vmem:[%s5172_s8 + $0xd0] sm:$0xff] }
 0x83f   : > { %2525 = vperm.xlu1 %3796, %v3233_v57   ;;  %v3238_v57 = vld [vmem:[%s5172_s8 + $0xe0] sm:$0xff] }
 0x843   : > { %2535 = vperm.xlu1 %3796, %v3235_v16   ;;  %v3240_v16 = vld [vmem:[%s5172_s8 + $0xf0] sm:$0xff] }
 0x847   : > { %2545 = vperm.xlu1 %3796, %v3237_v28   ;;  %v3258_v28 = vld [vmem:[%s5174_s10 + $0x80] sm:$0xff] }
 0x84b   : > { %2555 = vperm.xlu1 %3796, %v3239_v29   ;;  %v3260_v29 = vld [vmem:[%s5174_s10 + $0x90] sm:$0xff] }
 0x84f   : > { %2565 = vperm.xlu1 %3796, %v3241_v7   ;;  %v3262_v7 = vld [vmem:[%s5174_s10 + $0xa0] sm:$0xff] }
 0x853   : > { %2744 = vperm.xlu1 %3796, %v3259_v41   ;;  %v3264_v41 = vld [vmem:[%s5174_s10 + $0xb0] sm:$0xff] }
 0x857   : > { %2754 = vperm.xlu1 %3796, %v3261_v15   ;;  %v3266_v15 = vld [vmem:[%s5174_s10 + $0xc0] sm:$0xff] }
 0x85b   : > { %2764 = vperm.xlu1 %3796, %v3263_v51   ;;  %v3268_v51 = vld [vmem:[%s5174_s10 + $0xd0] sm:$0xff] }
 0x85f   : > { %2774 = vperm.xlu1 %3796, %v3265_v17   ;;  %v3270_v17 = vld [vmem:[%s5174_s10 + $0xe0] sm:$0xff] }
 0x863   : > { %2784 = vperm.xlu1 %3796, %v3267_v14   ;;  %v3272_v14 = vld [vmem:[%s5174_s10 + $0xf0] sm:$0xff] }
 0x867   : > { %2794 = vperm.xlu1 %3796, %v3269_v26  }
 0x86b   : > { %2804 = vperm.xlu1 %3796, %v3271_v18  }
 0x86f   : > { %2814 = vperm.xlu1 %3796, %v3273_v30  }
 0x8ab   : > { %v2249_v32 = vpop.xlane.xlu1 %2248 }
 0x8ac   : > { %v2250_v1 = vsub.f32 %v2246_v22, %v2249_v32  ;;  %v3227_v22 = vld [vmem:[%s5172_s8 + $0x88] sm:$0xff] }
 0x8ae   : > { %v2251_v34 = vmul.f32 1.442695, %v2250_v1 }
 0x8b0   : > { %3857 = vpow2.f32 %v2251_v34 }
 0x8ba   : > { %v3858_v9 = vpop.eup %3857 }
 0x8bb   : > { %v2253_v38 = vsel %vm2128_vm4, %v3858_v9, 0.0 }
 0x8bc   : > { %v2254_v39 = vsel %vm1383_vm1, %v2253_v38, 0.0 }
 0x8bd   : > { %2255 = vadd.xlane.f32.xlu0 %v2254_v39 }
 0x94a   : > { %v2256_v43 = vpop.xlane.xlu0 %2255 }
 0x94b   : > { %v2257_v50 = vadd.f32 1e-16, %v2256_v43 }
 0x94d   : > { %3859 = vrcp.f32 %v2257_v50 }
 0x957   : > { %v3860_v47 = vpop.eup %3859 }
 0x958   : > { %v2259_v12 = vmul.f32 %v3860_v47, %v2253_v38 }
 0x95a   : > { %v2260_v53 = vsel %vm1383_vm1, %v2259_v12, -inf }
 0x95b   : > { %2261 = vmax.xlane.f32.xlu0 %v2260_v53 }
 0x971   : > { %2495 = vperm.xlu0 %3795, %v3227_v22  }
 0x975   : > { %2510 = vperm.xlu0 %3795, %v3230_v19  }
 0x979   : > { %2520 = vperm.xlu0 %3795, %v3232_v25  }
 0x97d   : > { %2530 = vperm.xlu0 %3795, %v3234_v52  }
 0x981   : > { %2540 = vperm.xlu0 %3795, %v3236_v62  }
 0x985   : > { %2550 = vperm.xlu0 %3795, %v3238_v57  }
 0x989   : > { %2560 = vperm.xlu0 %3795, %v3240_v16  }
 0x98d   : > { %2739 = vperm.xlu0 %3795, %v3258_v28  }
 0x991   : > { %2749 = vperm.xlu0 %3795, %v3260_v29  }
 0x995   : > { %2759 = vperm.xlu0 %3795, %v3262_v7  }
 0x999   : > { %2769 = vperm.xlu0 %3795, %v3264_v41  }
 0x99d   : > { %2779 = vperm.xlu0 %3795, %v3266_v15  }
 0x9a1   : > { %2789 = vperm.xlu0 %3795, %v3268_v51  }
 0x9a5   : > { %2799 = vperm.xlu0 %3795, %v3270_v17  }
 0x9a9   : > { %2809 = vperm.xlu0 %3795, %v3272_v14  }
 0x9e8   : > { %v2262_v26 = vpop.xlane.xlu0 %2261 }
 0x9e9   : > { %v3209_v18 = vadd.f32 -1e-07, %v2262_v26 }
 0x9eb   : > { %v2264_v30 = vmin.f32 %v3209_v18, 0.001 }
 0x9ed   : > { %vm2265_vm5 = vcmp.gt.f32.partialorder %v2259_v12, %v2264_v30 }
 0x9ee   : > { %vm2266_vm6 = vmand %vm2265_vm5, %vm2128_vm4 }
 0x9ef   : > { %v4958_v32 = vsel %vm2266_vm6, 1.0, %v3966_v61 }
 0x9f0   : > { %v2268_v1 = vmul.f32 %v4958_v32, %v2259_v12  ;;  %3000 = vst [vmem:[%s469_s22] sm:$0x1] %v4958_v32 }
 0x9f2   : > { %v2273_v34 = vrot.slane %v2268_v1, %v4671_v58 }
 0x9f4   : > { %v2275_v9 = vmul.f32 %v2273_v34, %v2095_v5  ;;  %v2276_v38 = vmul.f32 %v2273_v34, %v2096_v13  ;;  %v2277_v4 = vmul.f32 %v2273_v34, %v2097_v60  ;;  %v2278_v61 = vmul.f32 %v2273_v34, %v2098_v59 }
 0x9f5   : > { %v2279_v39 = vmul.f32 %v2273_v34, %v2099_v42  ;;  %v2280_v43 = vmul.f32 %v2273_v34, %v2100_v56  ;;  %v2281_v5 = vmul.f32 %v2273_v34, %v2101_v49  ;;  %v2282_v11 = vmul.f32 %v2273_v34, %v2102_v27 }
 0x9f6   : > { %v2359_v50 = vpack.c.bf16 %v2276_v38, %v2275_v9  ;;  %v2360_v47 = vpack.c.bf16 %v2278_v61, %v2277_v4  ;;  %v2283_v46 = vmul.f32 %v2273_v34, %v2103_v40  ;;  %v2284_v24 = vmul.f32 %v2273_v34, %v2104_v55 }
 0x9f7   : > { %v2361_v23 = vpack.c.bf16 %v2280_v43, %v2279_v39  ;;  %v2362_v60 = vpack.c.bf16 %v2282_v11, %v2281_v5  ;;  %v2285_v59 = vmul.f32 %v2273_v34, %v2105_v45  ;;  %v2286_v2 = vmul.f32 %v2273_v34, %v2106_v21 }
 0x9f8   : > { %3651 = vmatprep.mubr.bf16.mxu0 %v2359_v50  ;;  %v2363_v13 = vpack.c.bf16 %v2284_v24, %v2283_v46  ;;  %v2287_v3 = vmul.f32 %v2273_v34, %v2107_v8  ;;  %v2288_v42 = vmul.f32 %v2273_v34, %v2108_v54  ;;  %v2289_v49 = vmul.f32 %v2273_v34, %v2109_v31  ;;  %v3841_v50 = vld [vmem:[%s5171_s7 + $0x60] sm:$0xff]  }
 0x9f9   : > { %3652 = vmatmul.mubr.bf16.vlgmr.msra.gmra.mrb[48].mxu0 %v2360_v47  ;;  %v2364_v44 = vpack.c.bf16 %v2286_v2, %v2285_v59  ;;  %v2290_v56 = vmul.f32 %v2273_v34, %v2110_v20  ;;  %v3842_v47 = vld [vmem:[%s5171_s7 + $0x68] sm:$0xff]  }
 0x9fa   : > { %3655 = vmatprep.mubr.bf16.mxu0 %v2361_v23  ;;  %v2365_v48 = vpack.c.bf16 %v2288_v42, %v2287_v3  ;;  %v3843_v23 = vld [vmem:[%s5171_s7 + $0x70] sm:$0xff]  }
 0x9fb   : > { %v2366_v27 = vpack.c.bf16 %v2290_v56, %v2289_v49 }
 0xa01   : > { %3656 = vmatmul.mubr.bf16.gmra.mrb[52].mxu0 %v2362_v60 }
 0xa02   : > { %3659 = vmatprep.mubr.bf16.mxu0 %v2363_v13  ;;  %v2496_v13 = vpop.permute.xlu0 %2495 }
 0xa09   : > { %3660 = vmatmul.mubr.bf16.gmra.mrb[56].mxu0 %v2364_v44 }
 0xa0a   : > { %3663 = vmatprep.mubr.bf16.mxu0 %v2365_v48 }
 0xa11   : > { %3664 = vmatmul.mubr.bf16.gmra.mrb[60].mxu0 %v2366_v27 }
 0xacc   : > { %v3653_v35 = vpop.f32.mrb[48].mxu0 }
 0xacd   : > { %v2401_v37 = vpop.f32.mrb[49].mxu0  ;;  %v2466_v10 = vadd.f32 %v3653_v35, %v2277_v4 }
 0xace   : > { %v3654_v40 = vpop.f32.mrb[50].mxu0  ;;  %v2464_v21 = vadd.f32 %v2401_v37, %v2275_v9 }
 0xacf   : > { %v2467_v45 = vadd.f32 %v3654_v40, %v2278_v61  ;;  %v2404_v55 = vpop.f32.mrb[51].mxu0  ;;  %v3838_v61 = vld [vmem:[%s5171_s7 + $0x48] sm:$0xff]  }
 0xad0   : > { %v2465_v6 = vadd.f32 %v2404_v55, %v2276_v38 }
 0xad1   : > { %v2481_v63 = vpack.c.bf16 %v2467_v45, %v2466_v10 }
 0xad2   : > { %v2480_v8 = vpack.c.bf16 %v2465_v6, %v2464_v21 }
 0xad4   : > { %v3657_v36 = vpop.f32.mrb[52].mxu0  ;;  %3667 = vmatprep.subr.bf16.mxu1 %v2480_v8 }
 0xad5   : > { %v2417_v0 = vpop.f32.mrb[53].mxu0  ;;  %3668 = vmatpush3.bf16.msra.mxu1 %v2480_v8  ;;  %v2470_v54 = vadd.f32 %v3657_v36, %v2281_v5  ;;  %v3844_v5 = vld [vmem:[%s5171_s7 + $0x78] sm:$0xff]  }
 0xad6   : > { %v3658_v31 = vpop.f32.mrb[54].mxu0  ;;  %3669 = vmatprep.subr.bf16.mxu1 %v2481_v63  ;;  %v2468_v53 = vadd.f32 %v2417_v0, %v2279_v39  ;;  %v3839_v39 = vld [vmem:[%s5171_s7 + $0x50] sm:$0xff]  }
 0xad7   : > { %v2471_v20 = vadd.f32 %v3658_v31, %v2282_v11  ;;  %v2420_v12 = vpop.f32.mrb[55].mxu0  ;;  %v3845_v11 = vld [vmem:[%s5173_s9 + $0x40] sm:$0xff]  }
 0xad8   : > { %v2469_v22 = vadd.f32 %v2420_v12, %v2280_v43  ;;  %v3840_v43 = vld [vmem:[%s5171_s7 + $0x58] sm:$0xff]   ;;  %3715 = vmatprep.mubr.bf16.mxu0 %v3845_v11 }
 0xad9   : > { %v2483_v19 = vpack.c.bf16 %v2471_v20, %v2470_v54  ;;  %3670 = vmatpush3.bf16.msra.mxu1 %v2481_v63 }
 0xada   : > { %v2482_v25 = vpack.c.bf16 %v2469_v22, %v2468_v53 }
 0xadc   : > { %v3661_v52 = vpop.f32.mrb[56].mxu0  ;;  %3671 = vmatprep.subr.bf16.mxu1 %v2482_v25 }
 0xadd   : > { %v2433_v62 = vpop.f32.mrb[57].mxu0  ;;  %3672 = vmatpush3.bf16.msra.mxu1 %v2482_v25  ;;  %v2474_v16 = vadd.f32 %v3661_v52, %v2285_v59 }
 0xade   : > { %v3662_v57 = vpop.f32.mrb[58].mxu0  ;;  %3673 = vmatprep.subr.bf16.mxu1 %v2483_v19  ;;  %v2472_v7 = vadd.f32 %v2433_v62, %v2283_v46  ;;  %v3846_v46 = vld [vmem:[%s5173_s9 + $0x60] sm:$0xff]  }
 0xadf   : > { %v2475_v28 = vadd.f32 %v3662_v57, %v2286_v2  ;;  %v2436_v29 = vpop.f32.mrb[59].mxu0  ;;  %v2511_v2 = vpop.permute.xlu0 %2510 }
 0xae0   : > { %v2473_v41 = vadd.f32 %v2436_v29, %v2284_v24  ;;  %v2491_v24 = vpop.permute.xlu1 %2490 }
 0xae1   : > { %v2485_v15 = vpack.c.bf16 %v2475_v28, %v2474_v16  ;;  %3674 = vmatpush3.bf16.msra.mxu1 %v2483_v19 }
 0xae2   : > { %v2484_v51 = vpack.c.bf16 %v2473_v41, %v2472_v7 }
 0xae4   : > { %v3665_v17 = vpop.f32.mrb[60].mxu0  ;;  %3675 = vmatprep.subr.bf16.mxu1 %v2484_v51  ;;  %v2501_v60 = vpop.permute.xlu1 %2500 }
 0xae5   : > { %v2449_v14 = vpop.f32.mrb[61].mxu0  ;;  %3676 = vmatpush3.bf16.msra.mxu1 %v2484_v51  ;;  %v2478_v18 = vadd.f32 %v3665_v17, %v2289_v49 }
 0xae6   : > { %v3666_v26 = vpop.f32.mrb[62].mxu0  ;;  %3677 = vmatprep.subr.bf16.mxu1 %v2485_v15  ;;  %v2476_v34 = vadd.f32 %v2449_v14, %v2287_v3 }
 0xae7   : > { %v2479_v30 = vadd.f32 %v3666_v26, %v2290_v56  ;;  %v2452_v1 = vpop.f32.mrb[63].mxu0 }
 0xae8   : > { %v2477_v9 = vadd.f32 %v2452_v1, %v2288_v42  ;;  %v2506_v59 = vpop.permute.xlu1 %2505  ;;  %v2521_v42 = vpop.permute.xlu0 %2520 }
 0xae9   : > { %v2487_v38 = vpack.c.bf16 %v2479_v30, %v2478_v18  ;;  %3678 = vmatpush3.bf16.msra.mxu1 %v2485_v15 }
 0xaea   : > { %v2486_v4 = vpack.c.bf16 %v2477_v9, %v2476_v34 }
 0xaec   : > { %3679 = vmatprep.subr.bf16.mxu1 %v2486_v4  ;;  %v2516_v3 = vpop.permute.xlu1 %2515  ;;  %v2531_v55 = vpop.permute.xlu0 %2530 }
 0xaed   : > { %3680 = vmatpush3.bf16.msra.mxu1 %v2486_v4 }
 0xaee   : > { %3681 = vmatprep.subr.bf16.mxu1 %v2487_v38 }
 0xaf0   : > { %v2526_v56 = vpop.permute.xlu1 %2525  ;;  %v2541_v19 = vpop.permute.xlu0 %2540 }
 0xaf1   : > { %3682 = vmatpush3.bf16.msra.mxu1 %v2487_v38 }
 0xaf4   : > { %3684 = vmatmul.mubr.bf16.vlgmr.msra.gmra.mrb[48].mxu1 %v3838_v61  ;;  %v2536_v8 = vpop.permute.xlu1 %2535  ;;  %v2551_v17 = vpop.permute.xlu0 %2550 }
 0xaf5   : > { %3687 = vmatprep.mubr.bf16.mxu1 %v3839_v39 }
 0xaf8   : > { %v2546_v57 = vpop.permute.xlu1 %2545 }
 0xafc   : > { %3688 = vmatmul.mubr.bf16.gmra.mrb[52].mxu1 %v3840_v43  ;;  %v2556_v1 = vpop.permute.xlu1 %2555  ;;  %v2561_v43 = vpop.permute.xlu0 %2560 }
 0xafd   : > { %3691 = vmatprep.mubr.bf16.mxu1 %v3841_v50 }
 0xb00   : > { %v2566_v11 = vpop.permute.xlu1 %2565 }
 0xb04   : > { %3692 = vmatmul.mubr.bf16.gmra.mrb[56].mxu1 %v3842_v47 }
 0xb05   : > { %3695 = vmatprep.mubr.bf16.mxu1 %v3843_v23 }
 0xb0c   : > { %3696 = vmatmul.mubr.bf16.gmra.mrb[60].mxu1 %v3844_v5 }
 0xb0d   : > { %3723 = vmatprep.mubr.bf16.mxu1 %v3846_v46 }
 0xbc7   : > { %v3685_v44 = vpop.f32.mrb[48].mxu1 }
 0xbc8   : > { %v2659_v48 = vadd.f32 %v3685_v44, %v2501_v60  ;;  %v2650_v49 = vpop.f32.mrb[49].mxu1 }
 0xbc9   : > { %v2651_v27 = vadd.f32 %v2650_v49, %v2491_v24  ;;  %v3686_v33 = vpop.f32.mrb[50].mxu1 }
 0xbca   : > { %v2662_v35 = vadd.f32 %v3686_v33, %v2506_v59  ;;  %v2653_v37 = vpop.f32.mrb[51].mxu1  ;;  %v2715_v10 = vmax.f32 %v2659_v48, 0.0  ;;  %v3849_v33 = vld [vmem:[%s5173_s9 + $0x50] sm:$0xff]  }
 0xbcb   : > { %v2654_v40 = vadd.f32 %v2653_v37, %v2496_v13  ;;  %v2713_v21 = vmax.f32 %v2651_v27, 0.0  ;;  %v3848_v27 = vld [vmem:[%s5173_s9 + $0x68] sm:$0xff]   ;;  %v3851_v37 = vld [vmem:[%s5173_s9 + $0x58] sm:$0xff]  }
 0xbcc   : > { %v2716_v45 = vmax.f32 %v2662_v35, 0.0  ;;  %v3850_v35 = vld [vmem:[%s5173_s9 + $0x70] sm:$0xff]  }
 0xbcd   : > { %v2714_v6 = vmax.f32 %v2654_v40, 0.0  ;;  %v3852_v40 = vld [vmem:[%s5173_s9 + $0x78] sm:$0xff]  }
 0xbce   : > { %v2730_v63 = vpack.c.bf16 %v2716_v45, %v2715_v10 }
 0xbcf   : > { %v2729_v36 = vpack.c.bf16 %v2714_v6, %v2713_v21  ;;  %v3689_v0 = vpop.f32.mrb[52].mxu1 }
 0xbd0   : > { %v2675_v31 = vadd.f32 %v3689_v0, %v2521_v42  ;;  %v2666_v54 = vpop.f32.mrb[53].mxu1 }
 0xbd1   : > { %v2667_v20 = vadd.f32 %v2666_v54, %v2511_v2  ;;  %v3690_v12 = vpop.f32.mrb[54].mxu1  ;;  %3699 = vmatprep.subr.bf16.mxu0 %v2729_v36  ;;  %3731 = vmatprep.subr.bf16.mxu1 %v2729_v36 }
 0xbd2   : > { %v2678_v53 = vadd.f32 %v3690_v12, %v2526_v56  ;;  %v2669_v22 = vpop.f32.mrb[55].mxu1  ;;  %3700 = vmatpush3.bf16.msra.mxu0 %v2729_v36  ;;  %3739 = vmatpush3.bf16.msra.mxu1 %v2729_v36  ;;  %v2719_v52 = vmax.f32 %v2675_v31, 0.0  ;;  %v3847_v56 = vld [vmem:[%s5173_s9 + $0x48] sm:$0xff]  }
 0xbd3   : > { %v2670_v25 = vadd.f32 %v2669_v22, %v2516_v3  ;;  %3701 = vmatprep.subr.bf16.mxu0 %v2730_v63  ;;  %3732 = vmatprep.subr.bf16.mxu1 %v2730_v63  ;;  %v2717_v16 = vmax.f32 %v2667_v20, 0.0 }
 0xbd4   : > { %v2720_v62 = vmax.f32 %v2678_v53, 0.0 }
 0xbd5   : > { %v2718_v28 = vmax.f32 %v2670_v25, 0.0 }
 0xbd6   : > { %v2732_v29 = vpack.c.bf16 %v2720_v62, %v2719_v52  ;;  %3702 = vmatpush3.bf16.msra.mxu0 %v2730_v63  ;;  %3740 = vmatpush3.bf16.msra.mxu1 %v2730_v63 }
 0xbd7   : > { %v2731_v7 = vpack.c.bf16 %v2718_v28, %v2717_v16  ;;  %v3693_v41 = vpop.f32.mrb[56].mxu1 }
 0xbd8   : > { %v2691_v15 = vadd.f32 %v3693_v41, %v2541_v19  ;;  %v2682_v51 = vpop.f32.mrb[57].mxu1 }
 0xbd9   : > { %v2683_v14 = vadd.f32 %v2682_v51, %v2531_v55  ;;  %v3694_v26 = vpop.f32.mrb[58].mxu1  ;;  %3703 = vmatprep.subr.bf16.mxu0 %v2731_v7  ;;  %3733 = vmatprep.subr.bf16.mxu1 %v2731_v7 }
 0xbda   : > { %v2694_v18 = vadd.f32 %v3694_v26, %v2546_v57  ;;  %v2685_v30 = vpop.f32.mrb[59].mxu1  ;;  %3704 = vmatpush3.bf16.msra.mxu0 %v2731_v7  ;;  %3741 = vmatpush3.bf16.msra.mxu1 %v2731_v7  ;;  %v2723_v9 = vmax.f32 %v2691_v15, 0.0 }
 0xbdb   : > { %v2686_v34 = vadd.f32 %v2685_v30, %v2536_v8  ;;  %3705 = vmatprep.subr.bf16.mxu0 %v2732_v29  ;;  %3734 = vmatprep.subr.bf16.mxu1 %v2732_v29  ;;  %v2721_v4 = vmax.f32 %v2683_v14, 0.0 }
 0xbdc   : > { %v2724_v38 = vmax.f32 %v2694_v18, 0.0 }
 0xbdd   : > { %v2722_v61 = vmax.f32 %v2686_v34, 0.0 }
 0xbde   : > { %v2734_v39 = vpack.c.bf16 %v2724_v38, %v2723_v9  ;;  %3706 = vmatpush3.bf16.msra.mxu0 %v2732_v29  ;;  %3742 = vmatpush3.bf16.msra.mxu1 %v2732_v29 }
 0xbdf   : > { %v2733_v50 = vpack.c.bf16 %v2722_v61, %v2721_v4  ;;  %v3697_v47 = vpop.f32.mrb[60].mxu1 }
 0xbe0   : > { %v2707_v23 = vadd.f32 %v3697_v47, %v2561_v43  ;;  %v2698_v5 = vpop.f32.mrb[61].mxu1 }
 0xbe1   : > { %v2699_v46 = vadd.f32 %v2698_v5, %v2551_v17  ;;  %v3698_v24 = vpop.f32.mrb[62].mxu1  ;;  %3707 = vmatprep.subr.bf16.mxu0 %v2733_v50  ;;  %3735 = vmatprep.subr.bf16.mxu1 %v2733_v50 }
 0xbe2   : > { %v2710_v60 = vadd.f32 %v3698_v24, %v2566_v11  ;;  %v2701_v13 = vpop.f32.mrb[63].mxu1  ;;  %3708 = vmatpush3.bf16.msra.mxu0 %v2733_v50  ;;  %3743 = vmatpush3.bf16.msra.mxu1 %v2733_v50  ;;  %v2727_v2 = vmax.f32 %v2707_v23, 0.0 }
 0xbe3   : > { %v2702_v59 = vadd.f32 %v2701_v13, %v2556_v1  ;;  %3709 = vmatprep.subr.bf16.mxu0 %v2734_v39  ;;  %3736 = vmatprep.subr.bf16.mxu1 %v2734_v39  ;;  %v2725_v42 = vmax.f32 %v2699_v46, 0.0 }
 0xbe4   : > { %v2728_v3 = vmax.f32 %v2710_v60, 0.0 }
 0xbe5   : > { %v2726_v44 = vmax.f32 %v2702_v59, 0.0 }
 0xbe6   : > { %v2736_v48 = vpack.c.bf16 %v2728_v3, %v2727_v2  ;;  %3710 = vmatpush3.bf16.msra.mxu0 %v2734_v39  ;;  %3744 = vmatpush3.bf16.msra.mxu1 %v2734_v39 }
 0xbe7   : > { %v2735_v49 = vpack.c.bf16 %v2726_v44, %v2725_v42 }
 0xbe9   : > { %3711 = vmatprep.subr.bf16.mxu0 %v2735_v49  ;;  %3737 = vmatprep.subr.bf16.mxu1 %v2735_v49 }
 0xbea   : > { %3712 = vmatpush3.bf16.msra.mxu0 %v2735_v49  ;;  %3745 = vmatpush3.bf16.msra.mxu1 %v2735_v49 }
 0xbeb   : > { %3713 = vmatprep.subr.bf16.mxu0 %v2736_v48  ;;  %3738 = vmatprep.subr.bf16.mxu1 %v2736_v48 }
 0xbee   : > { %3714 = vmatpush3.bf16.msra.mxu0 %v2736_v48  ;;  %3746 = vmatpush3.bf16.msra.mxu1 %v2736_v48 }
 0xbf1   : > { %3716 = vmatmul.mubr.bf16.vlgmr.msra.gmra.mrb[64].mxu0 %v3847_v56  ;;  %3724 = vmatmul.mubr.bf16.vlgmr.msra.gmra.mrb[64].mxu1 %v3848_v27 }
 0xbf2   : > { %3719 = vmatprep.mubr.bf16.mxu0 %v3849_v33  ;;  %3727 = vmatprep.mubr.bf16.mxu1 %v3850_v35 }
 0xbf9   : > { %3720 = vmatmul.mubr.bf16.gmra.mrb[68].mxu0 %v3851_v37  ;;  %3728 = vmatmul.mubr.bf16.gmra.mrb[68].mxu1 %v3852_v40 }
 0xbfa   : > { %3882 = shalt.err (!%p3879_p3)
}
 0xbfb   : > { %s3883_s22 = scalar_lea.hbm %s5050_s15, 16  ;;  %s3887_s0 = scalar_lea.hbm %s5177_s13, 32 }
 0xbfc   : > { %p3884_p4 = scmp.ne.s32.totalorder %s5050_s15, %s3883_s22  ;;  %p3888_p9 = scmp.lt.u32.totalorder %s5050_s15, %s5177_s13 }
 0xbfd   : > { %p3889_p10 = scmp.lt.u32.totalorder %s3887_s0, %s3883_s22  ;;  %p3891_p12 = scmp.lt.u32.totalorder %s3883_s22, %s5050_s15 }
 0xbfe   : > { %p3885_p7 = pnand %p3884_p4, %p4079_p5 }
 0xbff   : > { %p3890_p11 = por %p3889_p10, %p3888_p9 }
 0xc00   : > { %p3886_p8 = pneg %p3885_p7 }
 0xc01   : > { %p3892_p13 = por %p3891_p12, %p3890_p11 }
 0xc03   : > { %p3893_p0 = pnand %p3892_p13, %p3886_p8 }
 0xc05   : > { %3896 = shalt.err (!%p3893_p0)
}
 0xc06   : > { %3748 = dma.vmem_to_hbm [thread:$0]  (%p4079_p5), %s3036_s16, 16, %s5050_s15, %s3007_s1   ;;  %v2745_v10 = vpop.permute.xlu1 %2744  ;;  %v2740_v45 = vpop.permute.xlu0 %2739  ;;  %v5077_v25 = vrot.slane %v4958_v32, %v4671_v58 }
 0xc07   : > { %s3147_s2 = sshll.u32 %s4953_s21, 7  ;;  %s3298_s16 = sshll.u32 %s4062_s29, 11 }
 0xc08   : > { %s5083_s15 = scalar_lea.vmem [#allocation2], %s3147_s2  ;;  %s5111_s20 = scalar_lea.hbm %s5176_s12, %s3298_s16 }
 0xc09   : > { %s3019_s1 = sshll.u32 %s5083_s15, 4  ;;  %s3002_s22 = scalar_lea.sflag [#allocation3], %s4953_s21  ;;  %s5113_s1 = int_to_ptr.vmem [resolvable:$true] %s3019_s1 }
 0xc0a   : > { %v2755_v55 = vpop.permute.xlu1 %2754  ;;  %v2750_v21 = vpop.permute.xlu0 %2749  ;;  %s3897_s23 = scalar_lea.vmem %s5113_s1, 2048  ;;  %s3968_s30 = smov [#allocation2]  }
 0xc0b   : > { %p3898_p1 = scmp.ne.s32.totalorder %s5113_s1, %s3897_s23  ;;  %s3901_s0 = sshll.u32 %s3968_s30, 4  ;;  %s3902_s0 = int_to_ptr.vmem [resolvable:$false] %s3901_s0 }
 0xc0c   : > { %s3903_s24 = scalar_lea.vmem %s3902_s0, 4096  ;;  %p3904_p4 = scmp.lt.s32.totalorder %s5113_s1, %s3902_s0 }
 0xc0d   : > { %p3899_p2 = pnand %p3898_p1, %p4079_p5  ;;  %p3905_p7 = scmp.lt.s32.totalorder %s3903_s24, %s3897_s23 }
 0xc0e   : > { %v5072_v6 = vpop.permute.xlu1 %2764  ;;  %v2760_v63 = vpop.permute.xlu0 %2759 }
 0xc0f   : > { %p3900_p3 = pneg %p3899_p2  ;;  %p3906_p8 = por %p3905_p7, %p3904_p4 }
 0xc11   : > { %p3907_p9 = pnand %p3906_p8, %p3900_p3 }
 0xc12   : > { %v2775_v8 = vpop.permute.xlu1 %2774  ;;  %v2770_v36 = vpop.permute.xlu0 %2769 }
 0xc16   : > { %v2785_v0 = vpop.permute.xlu1 %2784  ;;  %v2780_v31 = vpop.permute.xlu0 %2779 }
 0xc1a   : > { %v2795_v54 = vpop.permute.xlu1 %2794  ;;  %v2790_v20 = vpop.permute.xlu0 %2789 }
 0xc1e   : > { %v2805_v12 = vpop.permute.xlu1 %2804  ;;  %v2800_v53 = vpop.permute.xlu0 %2799 }
 0xc22   : > { %v2815_v61 = vpop.permute.xlu1 %2814  ;;  %v2810_v39 = vpop.permute.xlu0 %2809 }
 0xcc4   : > { %v3717_v22 = vpop.f32.mrb[64].mxu0  ;;  %v3725_v19 = vpop.f32.mrb[64].mxu1 }
 0xcc5   : > { %v2908_v52 = vadd.f32 %v3717_v22, %v2750_v21  ;;  %v2940_v62 = vadd.f32 %v3725_v19, %v2790_v20  ;;  %v2899_v57 = vpop.f32.mrb[65].mxu0  ;;  %v2931_v16 = vpop.f32.mrb[65].mxu1 }
 0xcc6   : > { %v2900_v28 = vadd.f32 %v2899_v57, %v2740_v45  ;;  %v2932_v29 = vadd.f32 %v2931_v16, %v2780_v31  ;;  %v3718_v7 = vpop.f32.mrb[66].mxu0  ;;  %v3726_v41 = vpop.f32.mrb[66].mxu1 }
 0xcc7   : > { %v2970_v15 = vmul.f32 %v5077_v25, %v2908_v52  ;;  %v2978_v51 = vmul.f32 %v5077_v25, %v2940_v62  ;;  %v2911_v17 = vadd.f32 %v3718_v7, %v2755_v55  ;;  %v2943_v14 = vadd.f32 %v3726_v41, %v2795_v54  ;;  %v2902_v26 = vpop.f32.mrb[67].mxu0  ;;  %v2934_v18 = vpop.f32.mrb[67].mxu1 }
 0xcc8   : > { %v2968_v30 = vmul.f32 %v5077_v25, %v2900_v28  ;;  %v2976_v58 = vmul.f32 %v5077_v25, %v2932_v29  ;;  %v2903_v32 = vadd.f32 %v2902_v26, %v2745_v10  ;;  %v2935_v1 = vadd.f32 %v2934_v18, %v2785_v0 }
 0xcc9   : > { %2986 = vst [vmem:[%s5083_s15 + $0x10] sm:$0xff] %v2970_v15  ;;  %2994 = vst [vmem:[%s5083_s15 + $0x50] sm:$0xff] %v2978_v51  ;;  %v2971_v34 = vmul.f32 %v5077_v25, %v2911_v17  ;;  %v2979_v9 = vmul.f32 %v5077_v25, %v2943_v14 }
 0xcca   : > { %2984 = vst [vmem:[%s5083_s15] sm:$0xff] %v2968_v30  ;;  %2992 = vst [vmem:[%s5083_s15 + $0x40] sm:$0xff] %v2976_v58  ;;  %v2969_v38 = vmul.f32 %v5077_v25, %v2903_v32  ;;  %v2977_v4 = vmul.f32 %v5077_v25, %v2935_v1 }
 0xccb   : > { %2987 = vst [vmem:[%s5083_s15 + $0x18] sm:$0xff] %v2971_v34  ;;  %2995 = vst [vmem:[%s5083_s15 + $0x58] sm:$0xff] %v2979_v9 }
 0xccc   : > { %2985 = vst [vmem:[%s5083_s15 + $0x8] sm:$0xff] %v2969_v38  ;;  %2993 = vst [vmem:[%s5083_s15 + $0x48] sm:$0xff] %v2977_v4  ;;  %v3721_v43 = vpop.f32.mrb[68].mxu0  ;;  %v3729_v50 = vpop.f32.mrb[68].mxu1 }
 0xccd   : > { %v2924_v47 = vadd.f32 %v3721_v43, %v2770_v36  ;;  %v2956_v23 = vadd.f32 %v3729_v50, %v2810_v39  ;;  %v2915_v5 = vpop.f32.mrb[69].mxu0  ;;  %v2947_v11 = vpop.f32.mrb[69].mxu1 }
 0xcce   : > { %v2916_v46 = vadd.f32 %v2915_v5, %v2760_v63  ;;  %v2948_v24 = vadd.f32 %v2947_v11, %v2800_v53  ;;  %v3722_v60 = vpop.f32.mrb[70].mxu0  ;;  %v3730_v13 = vpop.f32.mrb[70].mxu1 }
 0xccf   : > { %v2974_v59 = vmul.f32 %v5077_v25, %v2924_v47  ;;  %v2982_v2 = vmul.f32 %v5077_v25, %v2956_v23  ;;  %v2927_v3 = vadd.f32 %v3722_v60, %v2775_v8  ;;  %v2959_v42 = vadd.f32 %v3730_v13, %v2815_v61  ;;  %v2918_v44 = vpop.f32.mrb[71].mxu0  ;;  %v2950_v48 = vpop.f32.mrb[71].mxu1 }
 0xcd0   : > { %v2972_v49 = vmul.f32 %v5077_v25, %v2916_v46  ;;  %v2980_v56 = vmul.f32 %v5077_v25, %v2948_v24  ;;  %v2919_v27 = vadd.f32 %v2918_v44, %v5072_v6  ;;  %v2951_v33 = vadd.f32 %v2950_v48, %v2805_v12 }
 0xcd1   : > { %2990 = vst [vmem:[%s5083_s15 + $0x30] sm:$0xff] %v2974_v59  ;;  %2998 = vst [vmem:[%s5083_s15 + $0x70] sm:$0xff] %v2982_v2  ;;  %v2975_v35 = vmul.f32 %v5077_v25, %v2927_v3  ;;  %v2983_v37 = vmul.f32 %v5077_v25, %v2959_v42 }
 0xcd2   : > { %2988 = vst [vmem:[%s5083_s15 + $0x20] sm:$0xff] %v2972_v49  ;;  %2996 = vst [vmem:[%s5083_s15 + $0x60] sm:$0xff] %v2980_v56  ;;  %v2973_v40 = vmul.f32 %v5077_v25, %v2919_v27  ;;  %v2981_v10 = vmul.f32 %v5077_v25, %v2951_v33 }
 0xcd3   : > { %2991 = vst [vmem:[%s5083_s15 + $0x38] sm:$0xff] %v2975_v35  ;;  %2999 = vst [vmem:[%s5083_s15 + $0x78] sm:$0xff] %v2983_v37 }
 0xcd4   : > { %2989 = vst [vmem:[%s5083_s15 + $0x28] sm:$0xff] %v2973_v40  ;;  %2997 = vst [vmem:[%s5083_s15 + $0x68] sm:$0xff] %v2981_v10 }
 0xcd5   : > { %3910 = shalt.err (!%p3907_p9)
}
 0xcd6   : > { %s3911_s27 = scalar_lea.hbm %s5111_s20, 2048  ;;  %s3915_s16 = scalar_lea.hbm %s5176_s12, 4096 }
 0xcd7   : > { %p3912_p10 = scmp.ne.s32.totalorder %s5111_s20, %s3911_s27  ;;  %p3916_p13 = scmp.lt.u32.totalorder %s5111_s20, %s5176_s12 }
 0xcd8   : > { %p3917_p0 = scmp.lt.u32.totalorder %s3915_s16, %s3911_s27  ;;  %p3919_p2 = scmp.lt.u32.totalorder %s3911_s27, %s5111_s20 }
 0xcd9   : > { %p3913_p11 = pnand %p3912_p10, %p4079_p5 }
 0xcda   : > { %p3918_p1 = por %p3917_p0, %p3916_p13 }
 0xcdb   : > { %p3914_p12 = pneg %p3913_p11 }
 0xcdc   : > { %p3920_p3 = por %p3919_p2, %p3918_p1 }
 0xcde   : > { %p3921_p4 = pnand %p3920_p3, %p3914_p12 }
 0xce0   : > { %3924 = shalt.err (!%p3921_p4)
}
 0xce1   : > { %s3969_s23 = smov 128   ;;  %s3970_s30 = smov 8  }
 0xce2   : > { %3747 = dma.vmem_to_hbm [thread:$0]  (%p4079_p5), %s5113_s1, 2048, %s5111_s20, %s3002_s22, %s3969_s23, %s3969_s23, %s3970_s30  }
 0xce3 PF: > { %p3758_p7 = scmp.ge.s32.totalorder %s3963_s28, 2  ;;  %s3047_s0 = sand.u32 1, %s3951_s25  }
 0xce4   : > { %s3048_s24 = scalar_lea.sflag [#allocation3], %s3047_s0 }
 0xce5   : > { %p3752_p8 = pnand %p3758_p7, %p4083_p6 }
 0xce7   : > { %3942 = dma.done.wait (!%p3752_p8), %s3048_s24, 2048  }
 0xce8   : > { %3944 = vsyncadd (!%p3752_p8), %s3048_s24, 4294965248  ;;  %s3057_s27 = scalar_lea.sflag [#allocation5], %s3047_s0 }
 0xce9   : > { %3946 = dma.done.wait (!%p3752_p8), %s3057_s27, 16  }
 0xcea   : > { %3948 = vsyncadd (!%p3752_p8), %s3057_s27, 4294967280  ;;  %s5189_s2 = sld [smem:[#allocation8_spill]]  ;;  %s5190_s27 = sld [smem:[#allocation9_spill]] }
 0xceb   : > { %p27_p5 = scmp.ge.s32.totalorder %s4066_s14, 4   ;;  %s5191_s25 = smov %s3955_s26 }
 0xcec   : > { %s5193_s28 = smov %s4066_s14 }
 0xced   :  { %29 = sbr.rel (!%p27_p5) target bundleno = 9 (0x9), region = 131 }
 0xcf0   : > { %s5192_s26 = smov %s5189_s2 }
 0xcf4   :  { %3061 = vsyncpa [#allocation3], 1 }
 0xcf5   :  { %3063 = vsyncpa [#allocation3 + $0x1], 1 }
 0xcf6   :  { %3064 = vsyncpa [#allocation5], 1 }
 0xcf7   :  { %3066 = vsyncpa [#allocation5 + $0x1], 1 }

</bundles_post_ra>
